<compile_context>
chip_gen: v7x
topology: tpu7x:2x2x1
jax: 0.10.0
libtpu: 0.0.40
codegen_flags: <defaults>
</compile_context>

<pallas_src>
import functools

import jax
import jax.numpy as jnp
from jax import lax
from jax.experimental import pallas as pl
from jax.experimental.pallas import tpu as pltpu


# ---------------------------------------------------------------------------
# Kernel: one grid step = one agent x one tile of `bb` graphs
#   embedder -> (RGCN + ReLU) rounds -> per-graph max pool -> critic head
# ---------------------------------------------------------------------------
def _relational_critic_kernel(
    unary_ref,    # (bb*N, Din)       node features for bb graphs of this agent (f32)
    adj_ref,      # (R*N, N)          stacked normalized adjacencies (f32, shared)
    w_emb_ref,    # (Din, E)          bf16
    b_emb_ref,    # (1, E)            f32
    w_root_ref,   # (E, E)            bf16
    w_rel_ref,    # (R, E, E)         bf16
    b_rgcn_ref,   # (1, E)            f32
    w1_ref,       # (1, E+OApad, H)   bf16  this agent's fused critic fc1
    b1_ref,       # (1, 1, H)         f32
    w2_ref,       # (1, H, Apad)      bf16  this agent's critic fc2 (lane-padded)
    b2_ref,       # (1, 1, Apad)      f32
    oact_ref,     # (1, bb, OApad)    f32   other agents' actions (padded)
    allq_ref,     # (1, bb, Apad)     f32   output: all Q-values (lane-padded)
    *,
    block_graphs, n_obj, n_rel, n_msg_rounds, matmul_dtype,
):
    f32 = jnp.float32
    cd = matmul_dtype
    N, R, G = n_obj, n_rel, block_graphs
    rows = G * N

    def mm(a, b):
        # weights are pre-cast in the wrapper; activations cast here; f32 accumulate
        return jnp.dot(a.astype(cd), b, preferred_element_type=f32)

    # ---- embedder: Linear(Din, E) ----
    h = mm(unary_ref[...], w_emb_ref[...]) + b_emb_ref[...]            # (rows, E) f32

    # ---- hoisted out of the round loop (JAX does not CSE broadcast_in_dim) ----
    adj_b = jnp.broadcast_to(adj_ref[...][None], (G, R * N, N))        # (G, R*N, N) f32
    w_root = w_root_ref[...]
    w_rel = w_rel_ref[...]                                             # (R, E, E) bf16
    b_rgcn = b_rgcn_ref[...]                                           # (1, E) f32
    E = h.shape[1]

    # ---- RGCN + ReLU rounds (shared weights repeated) ----
    # TODO(synk): switch to lax.fori_loop(..., unroll=True) if n_msg_rounds grows.
    for _ in range(n_msg_rounds):
        h3 = h.reshape(G, N, E)                                        # free (N == 8)
        # All R relations for a graph in ONE batched matmul (kept f32: 1/deg precision).
        agg = lax.dot_general(
            adj_b, h3,
            dimension_numbers=(((2,), (1,)), ((0,), (0,))),
            preferred_element_type=f32)                                # (G, R*N, E)
        out = mm(h, w_root)                                            # root term
        for r in range(R):
            agg_r = agg[:, r * N:(r + 1) * N, :].reshape(rows, E)      # free slice/collapse
            out = out + mm(agg_r, w_rel[r])                            # sum-of-matmuls (no concat)
        h = jnp.maximum(out + b_rgcn, 0.0)                             # ReLU

    # ---- global max pool per graph ----
    g = jnp.max(h.reshape(G, N, E), axis=1)                            # (G, E)

    # ---- this agent's critic head: Linear -> LeakyReLU(0.01) -> Linear ----
    critic_in = jnp.concatenate([g, oact_ref[0]], axis=-1)             # (G, E+OApad)
    z = mm(critic_in, w1_ref[0]) + b1_ref[0]
    z = jnp.where(z > 0, z, 0.01 * z)                                  # LeakyReLU(0.01)
    allq_ref[0] = mm(z, w2_ref[0]) + b2_ref[0]                         # lane-dense store


# ---------------------------------------------------------------------------
# Wrapper: grid over (agent, graph-tile), weights resident via constant index maps
# ---------------------------------------------------------------------------
def relational_critic_forward(unary, adj_norm, params, other_act, own_act, *,
                              batch, n_obj, nb_graph_layers, nb_iterations,
                              block_batch=None, matmul_dtype=jnp.bfloat16):
    n_agents, BN, d_in = unary.shape
    assert BN == batch * n_obj
    R = adj_norm.shape[0]
    E = params["w_emb"].shape[1]
    H = params["w1g"].shape[2]
    OA = params["w1o"].shape[1]
    A = params["w2"].shape[2]
    A_pad = ((A + 127) // 128) * 128          # lane-dense output store
    OA_pad = ((OA + 127) // 128) * 128        # lane-aligned fc1 K-fusion

    # graph-axis tile: bb graphs (= bb*n_obj feature rows) per grid step
    if block_batch is None:
        block_batch = batch if batch <= 256 else 256
    bb = block_batch
    assert batch % bb == 0, "block_batch must divide batch"
    nb = batch // bb

    cd = matmul_dtype
    unary_flat = unary.reshape(n_agents * batch * n_obj, d_in)
    adj_stack = adj_norm.reshape(R * n_obj, n_obj)      # stacked relations (shared by all graphs)

    # pre-cast weight operands to the matmul dtype (biases stay f32, added post-matmul)
    w_emb = params["w_emb"].astype(cd)
    w_root = params["w_root"].astype(cd)
    w_rel = params["w_rel"].astype(cd)
    # fuse critic fc1: [graph-embedding slice ; zero-padded other-actions slice] along K
    w1o_pad = jnp.pad(params["w1o"], ((0, 0), (0, OA_pad - OA), (0, 0)))
    w1 = jnp.concatenate([params["w1g"], w1o_pad], axis=1).astype(cd)   # (nA, E+OApad, H)
    w2 = jnp.pad(params["w2"], ((0, 0), (0, 0), (0, A_pad - A))).astype(cd)
    b2 = jnp.pad(params["b2"], ((0, 0), (0, 0), (0, A_pad - A)))
    oact_pad = jnp.pad(other_act, ((0, 0), (0, 0), (0, OA_pad - OA)))

    kernel = functools.partial(
        _relational_critic_kernel,
        block_graphs=bb, n_obj=n_obj, n_rel=R,
        n_msg_rounds=nb_graph_layers * nb_iterations, matmul_dtype=cd)

    grid_spec = pltpu.PrefetchScalarGridSpec(
        num_scalar_prefetch=0,
        grid=(n_agents, nb),
        in_specs=[
            pl.BlockSpec((bb * n_obj, d_in), lambda a, i: (a * nb + i, 0)),
            pl.BlockSpec((R * n_obj, n_obj), lambda a, i: (0, 0)),
            pl.BlockSpec((d_in, E),          lambda a, i: (0, 0)),
            pl.BlockSpec((1, E),             lambda a, i: (0, 0)),
            pl.BlockSpec((E, E),             lambda a, i: (0, 0)),
            pl.BlockSpec((R, E, E),          lambda a, i: (0, 0, 0)),
            pl.BlockSpec((1, E),             lambda a, i: (0, 0)),
            pl.BlockSpec((1, E + OA_pad, H), lambda a, i: (a, 0, 0)),
            pl.BlockSpec((1, 1, H),          lambda a, i: (a, 0, 0)),
            pl.BlockSpec((1, H, A_pad),      lambda a, i: (a, 0, 0)),
            pl.BlockSpec((1, 1, A_pad),      lambda a, i: (a, 0, 0)),
            pl.BlockSpec((1, bb, OA_pad),    lambda a, i: (a, i, 0)),
        ],
        out_specs=pl.BlockSpec((1, bb, A_pad), lambda a, i: (a, i, 0)),
    )

    all_q_pad = pl.pallas_call(
        kernel,
        out_shape=jax.ShapeDtypeStruct((n_agents, batch, A_pad), jnp.float32),
        grid_spec=grid_spec,
        compiler_params=pltpu.CompilerParams(
            dimension_semantics=("parallel", "parallel"),
            vmem_limit_bytes=48 * 1024 * 1024),
    )(unary_flat, adj_stack, w_emb, params["b_emb"], w_root, w_rel,
      params["b_rgcn"], w1, params["b1"], w2, b2, oact_pad)

    all_q = all_q_pad[:, :, :A]
    # q = all_q.gather(1, argmax(own_actions)) — kept outside the kernel
    # (avoids masked width-1 stores and in-kernel XLU argmax).
    idx = jnp.argmax(own_act, axis=-1)
    q = jnp.take_along_axis(all_q, idx[..., None], axis=-1)
    return q, all_q


# ---------------------------------------------------------------------------
# Pure-JAX reference (mirrors the PyTorch forward) for a sanity check
# ---------------------------------------------------------------------------
def reference_forward(unary, adj_norm, params, other_act, own_act,
                      *, batch, n_obj, nb_graph_layers, nb_iterations):
    n_agents = unary.shape[0]
    R = adj_norm.shape[0]
    E = params["w_emb"].shape[1]
    qs, allqs = [], []
    for a in range(n_agents):
        h = unary[a] @ params["w_emb"] + params["b_emb"]             # (B*N, E)
        for _ in range(nb_iterations * nb_graph_layers):
            out = h @ params["w_root"] + params["b_rgcn"]
            h3 = h.reshape(batch, n_obj, E)
            for r in range(R):
                msg = jnp.einsum('bne,ef->bnf', h3, params["w_rel"][r])
                out = out + jnp.einsum('ts,bse->bte', adj_norm[r],
                                       msg).reshape(batch * n_obj, E)
            h = jnp.maximum(out, 0.0)
        g = jnp.max(h.reshape(batch, n_obj, E), axis=1)
        z = g @ params["w1g"][a] + other_act[a] @ params["w1o"][a] + params["b1"][a]
        z = jnp.where(z > 0, z, 0.01 * z)
        all_q = z @ params["w2"][a] + params["b2"][a]
        idx = jnp.argmax(own_act[a], axis=1)
        qs.append(jnp.take_along_axis(all_q, idx[:, None], axis=1))
        allqs.append(all_q)
    return jnp.stack(qs), jnp.stack(allqs)


# ---------------------------------------------------------------------------
# Example run with deterministic synthetic parameters / inputs
# ---------------------------------------------------------------------------
if __name__ == "__main__":
    # Module hyperparameters (net_code '1g1i1f'; embed/hidden = module defaults)
    n_agents = 3
    batch = 8                    # multiple of 8 -> in-kernel reshapes are free
    n_obj = 8                    # spatial_tensors are (R, n_obj, n_obj)
    d_in = 16                    # input_dims[0]
    embed_size = 128
    hidden_dim = 128
    n_actions = 5
    n_rel = 2                    # nb_edge_types == len(spatial_tensors)
    nb_graph_layers, nb_iterations = 1, 1
    OA = n_actions * (n_agents - 1)
    BN = batch * n_obj

    key = jax.random.PRNGKey(0)
    keys = jax.random.split(key, 16)

    # --- deterministic binary spatial tensors (the relational graph) ---
    eye = jnp.eye(n_obj, dtype=jnp.float32)
    ring = jnp.roll(eye, 1, axis=1)                       # relation 0: i -> i+1
    rel1 = (jax.random.uniform(keys[0], (n_obj, n_obj)) > 0.6).astype(jnp.float32)
    spatial = jnp.stack([ring, rel1])                     # (R, N, N), [r, src, tgt]

    # RGCN mean aggregation with PyG source->target convention:
    #   out[t] += mean_{s : A_r[s,t] != 0} W_r x[s]
    deg = jnp.maximum(jnp.sum(spatial, axis=1), 1.0)      # in-degree per target (R, N)
    adj_norm = jnp.transpose(spatial, (0, 2, 1)) / deg[:, :, None]   # (R, N, N)

    # --- deterministic parameters (Linear weights stored as (in, out)) ---
    def init(k, shape, scale=0.1):
        return scale * jax.random.normal(k, shape, dtype=jnp.float32)

    params = {
        "w_emb":  init(keys[1], (d_in, embed_size)),
        "b_emb":  init(keys[2], (1, embed_size)),
        "w_root": init(keys[3], (embed_size, embed_size)),
        "w_rel":  init(keys[4], (n_rel, embed_size, embed_size)),
        "b_rgcn": init(keys[5], (1, embed_size)),
        # per-agent critic heads, fc1 split into graph-embedding / other-action parts
        "w1g": init(keys[6], (n_agents, embed_size, hidden_dim)),
        "w1o": init(keys[7], (n_agents, OA, hidden_dim)),
        "b1":  init(keys[8], (n_agents, 1, hidden_dim)),
        "w2":  init(keys[9], (n_agents, hidden_dim, n_actions)),
        "b2":  init(keys[10], (n_agents, 1, n_actions)),
    }

    # --- inputs ---
    # unary_tensors[a_i]: (batch, n_obj, d_in) -> flatten(0,1) -> (BN, d_in)
    unary = jax.random.normal(keys[11], (n_agents, BN, d_in), dtype=jnp.float32)
    # actions[a_i]: (batch, n_actions) one-hot
    act_idx = jax.random.randint(keys[12], (n_agents, batch), 0, n_actions)
    actions = jax.nn.one_hot(act_idx, n_actions, dtype=jnp.float32)  # (nA, B, A)
    # other_actions[a_i] = concat over j != a_i of actions[j]
    other_act = jnp.stack([
        jnp.concatenate([actions[j] for j in range(n_agents) if j != a], axis=1)
        for a in range(n_agents)])                        # (nA, B, OA)

    q_ref, all_q_ref = reference_forward(
        unary, adj_norm, params, other_act, actions,
        batch=batch, n_obj=n_obj,
        nb_graph_layers=nb_graph_layers, nb_iterations=nb_iterations)

    # --- structural check: f32 matmul path, tight tolerance ---
    q32, allq32 = relational_critic_forward(
        unary, adj_norm, params, other_act, actions,
        batch=batch, n_obj=n_obj,
        nb_graph_layers=nb_graph_layers, nb_iterations=nb_iterations,
        matmul_dtype=jnp.float32)
    jax.block_until_ready((q32, allq32))
    assert jnp.allclose(allq32, all_q_ref, atol=1e-3, rtol=1e-3), "all_q mismatch (f32)"
    assert jnp.allclose(q32, q_ref, atol=1e-3, rtol=1e-3), "q mismatch (f32)"

    # --- production config per perf review: bf16 matmul inputs, f32 accumulate ---
    q, all_q = relational_critic_forward(
        unary, adj_norm, params, other_act, actions,
        batch=batch, n_obj=n_obj,
        nb_graph_layers=nb_graph_layers, nb_iterations=nb_iterations,
        matmul_dtype=jnp.bfloat16)
    jax.block_until_ready((q, all_q))
    assert jnp.allclose(all_q, all_q_ref, atol=5e-2, rtol=5e-2), "all_q mismatch (bf16)"
    assert jnp.allclose(q, q_ref, atol=5e-2, rtol=5e-2), "q mismatch (bf16)"

    print("KERNEL_OK")
</pallas_src>

<mosaic_0001>
module attributes {stable_mosaic.version = 11 : i64} {
  func.func @_relational_critic_kernel(%arg0: i32, %arg1: i32, %arg2: memref<64x16xf32, #tpu.memory_space<vmem>>, %arg3: memref<16x8xf32, #tpu.memory_space<vmem>>, %arg4: memref<16x128xf32, #tpu.memory_space<vmem>>, %arg5: memref<1x128xf32, #tpu.memory_space<vmem>>, %arg6: memref<128x128xf32, #tpu.memory_space<vmem>>, %arg7: memref<2x128x128xf32, #tpu.memory_space<vmem>>, %arg8: memref<1x128xf32, #tpu.memory_space<vmem>>, %arg9: memref<1x256x128xf32, #tpu.memory_space<vmem>>, %arg10: memref<1x1x128xf32, #tpu.memory_space<vmem>>, %arg11: memref<1x128x128xf32, #tpu.memory_space<vmem>>, %arg12: memref<1x1x128xf32, #tpu.memory_space<vmem>>, %arg13: memref<1x8x128xf32, #tpu.memory_space<vmem>>, %arg14: memref<1x8x128xf32, #tpu.memory_space<vmem>>) attributes {dimension_semantics = [#tpu.dimension_semantics<parallel>, #tpu.dimension_semantics<parallel>], iteration_bounds = array<i64: 3, 1>, scalar_prefetch = 0 : i64, scratch_operands = 0 : i64, tpu.core_type = #tpu.core_type<tc>, window_params = [{transform_indices = @transform_0, window_bounds = array<i64: 64, 16>}, {pipeline_mode = #tpu.pipeline_mode<synchronous>, transform_indices = @transform_1, window_bounds = array<i64: 16, 8>}, {pipeline_mode = #tpu.pipeline_mode<synchronous>, transform_indices = @transform_2, window_bounds = array<i64: 16, 128>}, {pipeline_mode = #tpu.pipeline_mode<synchronous>, transform_indices = @transform_3, window_bounds = array<i64: 1, 128>}, {pipeline_mode = #tpu.pipeline_mode<synchronous>, transform_indices = @transform_4, window_bounds = array<i64: 128, 128>}, {pipeline_mode = #tpu.pipeline_mode<synchronous>, transform_indices = @transform_5, window_bounds = array<i64: 2, 128, 128>}, {pipeline_mode = #tpu.pipeline_mode<synchronous>, transform_indices = @transform_6, window_bounds = array<i64: 1, 128>}, {transform_indices = @transform_7, window_bounds = array<i64: 1, 256, 128>}, {transform_indices = @transform_8, window_bounds = array<i64: 1, 1, 128>}, {transform_indices = @transform_9, window_bounds = array<i64: 1, 128, 128>}, {transform_indices = @transform_10, window_bounds = array<i64: 1, 1, 128>}, {transform_indices = @transform_11, window_bounds = array<i64: 1, 8, 128>}, {transform_indices = @transform_12, window_bounds = array<i64: 1, 8, 128>}]} {
    %c0 = arith.constant 0 : index
    %c0_0 = arith.constant 0 : index
    %0 = vector.load %arg2[%c0, %c0_0] : memref<64x16xf32, #tpu.memory_space<vmem>>, vector<64x16xf32>
    %c0_1 = arith.constant 0 : index
    %c0_2 = arith.constant 0 : index
    %1 = vector.load %arg4[%c0_1, %c0_2] : memref<16x128xf32, #tpu.memory_space<vmem>>, vector<16x128xf32>
    %cst = arith.constant dense<0.000000e+00> : vector<64x128xf32>
    %2 = tpu.matmul %0, %1, %cst {dimension_numbers = #tpu.dot_dimension_numbers<[1], [0], [0], [1], [0, 0, 1, 1], [], []>} : vector<64x16xf32>, vector<16x128xf32>, vector<64x128xf32> -> vector<64x128xf32>
    %c0_3 = arith.constant 0 : index
    %c0_4 = arith.constant 0 : index
    %3 = vector.load %arg5[%c0_3, %c0_4] : memref<1x128xf32, #tpu.memory_space<vmem>>, vector<1x128xf32>
    %4 = vector.broadcast %3 : vector<1x128xf32> to vector<64x128xf32>
    %5 = arith.addf %2, %4 : vector<64x128xf32>
    %c0_5 = arith.constant 0 : index
    %c0_6 = arith.constant 0 : index
    %6 = vector.load %arg3[%c0_5, %c0_6] : memref<16x8xf32, #tpu.memory_space<vmem>>, vector<16x8xf32>
    %7 = vector.shape_cast %6 : vector<16x8xf32> to vector<1x16x8xf32>
    %8 = vector.shape_cast %7 : vector<1x16x8xf32> to vector<1x16x8xf32>
    %9 = vector.broadcast %8 : vector<1x16x8xf32> to vector<8x16x8xf32>
    %c0_7 = arith.constant 0 : index
    %c0_8 = arith.constant 0 : index
    %10 = vector.load %arg6[%c0_7, %c0_8] : memref<128x128xf32, #tpu.memory_space<vmem>>, vector<128x128xf32>
    %c0_9 = arith.constant 0 : index
    %c0_10 = arith.constant 0 : index
    %c0_11 = arith.constant 0 : index
    %11 = vector.load %arg7[%c0_9, %c0_10, %c0_11] : memref<2x128x128xf32, #tpu.memory_space<vmem>>, vector<2x128x128xf32>
    %c0_12 = arith.constant 0 : index
    %c0_13 = arith.constant 0 : index
    %12 = vector.load %arg8[%c0_12, %c0_13] : memref<1x128xf32, #tpu.memory_space<vmem>>, vector<1x128xf32>
    %13 = vector.shape_cast %5 : vector<64x128xf32> to vector<8x8x128xf32>
    %cst_14 = arith.constant dense<0.000000e+00> : vector<8x16x128xf32>
    %14 = tpu.matmul %9, %13, %cst_14 {dimension_numbers = #tpu.dot_dimension_numbers<[2], [1], [1], [2], [0, 0, 0, 1, 1, 2], [0], [0]>} : vector<8x16x8xf32>, vector<8x8x128xf32>, vector<8x16x128xf32> -> vector<8x16x128xf32>
    %cst_15 = arith.constant dense<0.000000e+00> : vector<64x128xf32>
    %15 = tpu.matmul %5, %10, %cst_15 {dimension_numbers = #tpu.dot_dimension_numbers<[1], [0], [0], [1], [0, 0, 1, 1], [], []>} : vector<64x128xf32>, vector<128x128xf32>, vector<64x128xf32> -> vector<64x128xf32>
    %16 = vector.extract_strided_slice %14 {offsets = [0, 0, 0], sizes = [8, 8, 128], strides = [1, 1, 1]} : vector<8x16x128xf32> to vector<8x8x128xf32>
    %17 = vector.shape_cast %16 : vector<8x8x128xf32> to vector<64x128xf32>
    %18 = vector.extract_strided_slice %11 {offsets = [0, 0, 0], sizes = [1, 128, 128], strides = [1, 1, 1]} : vector<2x128x128xf32> to vector<1x128x128xf32>
    %19 = vector.shape_cast %18 : vector<1x128x128xf32> to vector<128x128xf32>
    %cst_16 = arith.constant dense<0.000000e+00> : vector<64x128xf32>
    %20 = tpu.matmul %17, %19, %cst_16 {dimension_numbers = #tpu.dot_dimension_numbers<[1], [0], [0], [1], [0, 0, 1, 1], [], []>} : vector<64x128xf32>, vector<128x128xf32>, vector<64x128xf32> -> vector<64x128xf32>
    %21 = arith.addf %15, %20 : vector<64x128xf32>
    %22 = vector.extract_strided_slice %14 {offsets = [0, 8, 0], sizes = [8, 8, 128], strides = [1, 1, 1]} : vector<8x16x128xf32> to vector<8x8x128xf32>
    %23 = vector.shape_cast %22 : vector<8x8x128xf32> to vector<64x128xf32>
    %24 = vector.extract_strided_slice %11 {offsets = [1, 0, 0], sizes = [1, 128, 128], strides = [1, 1, 1]} : vector<2x128x128xf32> to vector<1x128x128xf32>
    %25 = vector.shape_cast %24 : vector<1x128x128xf32> to vector<128x128xf32>
    %cst_17 = arith.constant dense<0.000000e+00> : vector<64x128xf32>
    %26 = tpu.matmul %23, %25, %cst_17 {dimension_numbers = #tpu.dot_dimension_numbers<[1], [0], [0], [1], [0, 0, 1, 1], [], []>} : vector<64x128xf32>, vector<128x128xf32>, vector<64x128xf32> -> vector<64x128xf32>
    %27 = arith.addf %21, %26 : vector<64x128xf32>
    %28 = vector.broadcast %12 : vector<1x128xf32> to vector<64x128xf32>
    %29 = arith.addf %27, %28 : vector<64x128xf32>
    %cst_18 = arith.constant 0.000000e+00 : f32
    %30 = vector.broadcast %cst_18 : f32 to vector<64x128xf32>
    %31 = arith.maximumf %29, %30 : vector<64x128xf32>
    %32 = vector.shape_cast %31 : vector<64x128xf32> to vector<8x8x128xf32>
    %cst_19 = arith.constant dense<0xFF800000> : vector<8x128xf32>
    %33 = vector.multi_reduction <maximumf>, %32, %cst_19 [1] : vector<8x8x128xf32> to vector<8x128xf32>
    %c0_20 = arith.constant 0 : index
    %c0_21 = arith.constant 0 : index
    %c0_22 = arith.constant 0 : index
    %34 = vector.load %arg13[%c0_20, %c0_21, %c0_22] : memref<1x8x128xf32, #tpu.memory_space<vmem>>, vector<1x8x128xf32>
    %35 = vector.shape_cast %34 : vector<1x8x128xf32> to vector<8x128xf32>
    %36 = tpu.concatenate %33, %35 in 1 : vector<8x128xf32>, vector<8x128xf32> -> vector<8x256xf32>
    %c0_23 = arith.constant 0 : index
    %c0_24 = arith.constant 0 : index
    %c0_25 = arith.constant 0 : index
    %37 = vector.load %arg9[%c0_23, %c0_24, %c0_25] : memref<1x256x128xf32, #tpu.memory_space<vmem>>, vector<1x256x128xf32>
    %38 = vector.shape_cast %37 : vector<1x256x128xf32> to vector<256x128xf32>
    %cst_26 = arith.constant dense<0.000000e+00> : vector<8x128xf32>
    %39 = tpu.matmul %36, %38, %cst_26 {dimension_numbers = #tpu.dot_dimension_numbers<[1], [0], [0], [1], [0, 0, 1, 1], [], []>} : vector<8x256xf32>, vector<256x128xf32>, vector<8x128xf32> -> vector<8x128xf32>
    %c0_27 = arith.constant 0 : index
    %c0_28 = arith.constant 0 : index
    %c0_29 = arith.constant 0 : index
    %40 = vector.load %arg10[%c0_27, %c0_28, %c0_29] : memref<1x1x128xf32, #tpu.memory_space<vmem>>, vector<1x1x128xf32>
    %41 = vector.shape_cast %40 : vector<1x1x128xf32> to vector<1x128xf32>
    %42 = vector.broadcast %41 : vector<1x128xf32> to vector<8x128xf32>
    %43 = arith.addf %39, %42 : vector<8x128xf32>
    %cst_30 = arith.constant 0.000000e+00 : f32
    %44 = vector.broadcast %cst_30 : f32 to vector<8x128xf32>
    %45 = arith.cmpf ogt, %43, %44 : vector<8x128xf32>
    %cst_31 = arith.constant 0.00999999977 : f32
    %46 = vector.broadcast %cst_31 : f32 to vector<8x128xf32>
    %47 = arith.mulf %46, %43 : vector<8x128xf32>
    %48 = arith.select %45, %43, %47 : vector<8x128xi1>, vector<8x128xf32>
    %c0_32 = arith.constant 0 : index
    %c0_33 = arith.constant 0 : index
    %c0_34 = arith.constant 0 : index
    %49 = vector.load %arg11[%c0_32, %c0_33, %c0_34] : memref<1x128x128xf32, #tpu.memory_space<vmem>>, vector<1x128x128xf32>
    %50 = vector.shape_cast %49 : vector<1x128x128xf32> to vector<128x128xf32>
    %cst_35 = arith.constant dense<0.000000e+00> : vector<8x128xf32>
    %51 = tpu.matmul %48, %50, %cst_35 {dimension_numbers = #tpu.dot_dimension_numbers<[1], [0], [0], [1], [0, 0, 1, 1], [], []>} : vector<8x128xf32>, vector<128x128xf32>, vector<8x128xf32> -> vector<8x128xf32>
    %c0_36 = arith.constant 0 : index
    %c0_37 = arith.constant 0 : index
    %c0_38 = arith.constant 0 : index
    %52 = vector.load %arg12[%c0_36, %c0_37, %c0_38] : memref<1x1x128xf32, #tpu.memory_space<vmem>>, vector<1x1x128xf32>
    %53 = vector.shape_cast %52 : vector<1x1x128xf32> to vector<1x128xf32>
    %54 = vector.broadcast %53 : vector<1x128xf32> to vector<8x128xf32>
    %55 = arith.addf %51, %54 : vector<8x128xf32>
    %c0_39 = arith.constant 0 : index
    %c0_40 = arith.constant 0 : index
    %c0_41 = arith.constant 0 : index
    %56 = vector.load %arg14[%c0_39, %c0_40, %c0_41] : memref<1x8x128xf32, #tpu.memory_space<vmem>>, vector<1x8x128xf32>
    %57 = vector.shape_cast %56 : vector<1x8x128xf32> to vector<8x128xf32>
    %58 = vector.shape_cast %55 : vector<8x128xf32> to vector<1x8x128xf32>
    tpu.vector_store %arg14[%c0_39, %c0_40, %c0_41], %58 {strides = array<i32>} : memref<1x8x128xf32, #tpu.memory_space<vmem>>, vector<1x8x128xf32>,
    return
  }
  func.func @transform_0(%arg0: i32, %arg1: i32) -> (i32, i32) {
    %c1_i32 = arith.constant 1 : i32
    %0 = arith.muli %arg0, %c1_i32 : i32
    %1 = arith.addi %0, %arg1 : i32
    %c0_i32 = arith.constant 0 : i32
    %c0_i32_0 = arith.constant 0 : i32
    return %1, %c0_i32 : i32, i32
  }
  func.func @transform_1(%arg0: i32, %arg1: i32) -> (i32, i32) {
    %c0_i32 = arith.constant 0 : i32
    %c0_i32_0 = arith.constant 0 : i32
    %c0_i32_1 = arith.constant 0 : i32
    return %c0_i32, %c0_i32_0 : i32, i32
  }
  func.func @transform_2(%arg0: i32, %arg1: i32) -> (i32, i32) {
    %c0_i32 = arith.constant 0 : i32
    %c0_i32_0 = arith.constant 0 : i32
    %c0_i32_1 = arith.constant 0 : i32
    return %c0_i32, %c0_i32_0 : i32, i32
  }
  func.func @transform_3(%arg0: i32, %arg1: i32) -> (i32, i32) {
    %c0_i32 = arith.constant 0 : i32
    %c0_i32_0 = arith.constant 0 : i32
    %c0_i32_1 = arith.constant 0 : i32
    return %c0_i32, %c0_i32_0 : i32, i32
  }
  func.func @transform_4(%arg0: i32, %arg1: i32) -> (i32, i32) {
    %c0_i32 = arith.constant 0 : i32
    %c0_i32_0 = arith.constant 0 : i32
    %c0_i32_1 = arith.constant 0 : i32
    return %c0_i32, %c0_i32_0 : i32, i32
  }
  func.func @transform_5(%arg0: i32, %arg1: i32) -> (i32, i32, i32) {
    %c0_i32 = arith.constant 0 : i32
    %c0_i32_0 = arith.constant 0 : i32
    %c0_i32_1 = arith.constant 0 : i32
    %c0_i32_2 = arith.constant 0 : i32
    return %c0_i32, %c0_i32_0, %c0_i32_1 : i32, i32, i32
  }
  func.func @transform_6(%arg0: i32, %arg1: i32) -> (i32, i32) {
    %c0_i32 = arith.constant 0 : i32
    %c0_i32_0 = arith.constant 0 : i32
    %c0_i32_1 = arith.constant 0 : i32
    return %c0_i32, %c0_i32_0 : i32, i32
  }
  func.func @transform_7(%arg0: i32, %arg1: i32) -> (i32, i32, i32) {
    %c0_i32 = arith.constant 0 : i32
    %c0_i32_0 = arith.constant 0 : i32
    %c0_i32_1 = arith.constant 0 : i32
    return %arg0, %c0_i32, %c0_i32_0 : i32, i32, i32
  }
  func.func @transform_8(%arg0: i32, %arg1: i32) -> (i32, i32, i32) {
    %c0_i32 = arith.constant 0 : i32
    %c0_i32_0 = arith.constant 0 : i32
    %c0_i32_1 = arith.constant 0 : i32
    return %arg0, %c0_i32, %c0_i32_0 : i32, i32, i32
  }
  func.func @transform_9(%arg0: i32, %arg1: i32) -> (i32, i32, i32) {
    %c0_i32 = arith.constant 0 : i32
    %c0_i32_0 = arith.constant 0 : i32
    %c0_i32_1 = arith.constant 0 : i32
    return %arg0, %c0_i32, %c0_i32_0 : i32, i32, i32
  }
  func.func @transform_10(%arg0: i32, %arg1: i32) -> (i32, i32, i32) {
    %c0_i32 = arith.constant 0 : i32
    %c0_i32_0 = arith.constant 0 : i32
    %c0_i32_1 = arith.constant 0 : i32
    return %arg0, %c0_i32, %c0_i32_0 : i32, i32, i32
  }
  func.func @transform_11(%arg0: i32, %arg1: i32) -> (i32, i32, i32) {
    %c0_i32 = arith.constant 0 : i32
    %c0_i32_0 = arith.constant 0 : i32
    return %arg0, %arg1, %c0_i32 : i32, i32, i32
  }
  func.func @transform_12(%arg0: i32, %arg1: i32) -> (i32, i32, i32) {
    %c0_i32 = arith.constant 0 : i32
    %c0_i32_0 = arith.constant 0 : i32
    return %arg0, %arg1, %c0_i32 : i32, i32, i32
  }
}

</mosaic_0001>

<bundles_post_ra>
// kernel: tpu_custom_call.1
= control target key start
LH: loop header
LB: loop body
LE: loop exit
PB: predicated region body
PF: predicated region fallthrough
CT: control target
= control target key end

     0   :  { %s3848_s0 = inlined_call_operand.vmem [shape: f32[192,16], index: 0, kind: input, shape index: {}]   ;;  %s3849_s1 = inlined_call_operand.vmem [shape: f32[16,8], index: 1, kind: input, shape index: {}]   ;;  %s3850_s2 = inlined_call_operand.hbm [shape: f32[16,128], index: 2, kind: input, shape index: {}]   ;;  %s3851_s3 = inlined_call_operand.vmem [shape: f32[1,128], index: 3, kind: input, shape index: {}]   ;;  %s3852_s4 = inlined_call_operand.hbm [shape: f32[128,128], index: 4, kind: input, shape index: {}]   ;;  %s3853_s5 = inlined_call_operand.vmem [shape: f32[2,128,128], index: 5, kind: input, shape index: {}]   ;;  %s3854_s6 = inlined_call_operand.vmem [shape: f32[1,128], index: 6, kind: input, shape index: {}]   ;;  %s3855_s7 = inlined_call_operand.hbm [shape: f32[3,256,128], index: 7, kind: input, shape index: {}]   ;;  %s3856_s8 = inlined_call_operand.hbm [shape: f32[3,1,128], index: 8, kind: input, shape index: {}]   ;;  %s3857_s9 = inlined_call_operand.hbm [shape: f32[3,128,128], index: 9, kind: input, shape index: {}]   ;;  %s3858_s10 = inlined_call_operand.vmem [shape: f32[3,1,128], index: 10, kind: input, shape index: {}]   ;;  %s3859_s11 = inlined_call_operand.vmem [shape: f32[3,8,128], index: 11, kind: input, shape index: {}]   ;;  %s3860_s12 = inlined_call_operand.hbm [shape: f32[3,8,128], index: 12, kind: output, shape index: {}]  }
   0x1   :  { %3883 = sst [smem:[#allocation18_spill]] %s3848_s0 }
   0x2   :  { %3884 = sst [smem:[#allocation19_spill]] %s3849_s1 }
   0x3   :  { %3885 = sst [smem:[#allocation20_spill]] %s3850_s2 }
   0x4   :  { %3886 = sst [smem:[#allocation21_spill]] %s3851_s3 }
   0x5   :  { %3887 = sst [smem:[#allocation22_spill]] %s3853_s5 }
   0x6   :  { %3888 = sst [smem:[#allocation23_spill]] %s3854_s6 }
   0x7   :  { %3889 = sst [smem:[#allocation24_spill]] %s3858_s10 }
   0x8   :  { %3890 = sst [smem:[#allocation25_spill]] %s3859_s11 }
   0x9   :  { %3891 = sst [smem:[#allocation26_spill]] %s3860_s12 }
   0xa   :  { %17 = vsyncpa [#allocation3], 0 }
   0xb   :  { %18 = vsyncpa [#allocation6], 0 }
   0xc   :  { %19 = vsyncpa [#allocation4], 0 }
   0xd   :  { %21 = vsyncpa [#allocation4 + $0x1], 0  ;;  %s3249_s21 = smov 0   ;;  %s3251_s22 = smov 0  }
   0xe   :  { %s3253_s23 = smov 0   ;;  %s3255_s24 = smov 0  }
   0xf   :  { %s3257_s25 = smov 0   ;;  %s3259_s26 = smov 0  }
  0x10 LB: > { %3892 = sst [smem:[#allocation15_spill]] %s3151_s21  ;;  %s3280_s27 = sadd.s32 4294967295, %s3171_s26   ;;  %s3171_s26 = sphi %s3259_s26, %s27_s26   ;;  %s3167_s25 = sphi %s3257_s25, %s3937_s25   ;;  %s3163_s24 = sphi %s3255_s24, %s3936_s24   ;;  %s3159_s23 = sphi %s3253_s23, %s3935_s23   ;;  %s3155_s22 = sphi %s3251_s22, %s3934_s22   ;;  %s3151_s21 = sphi %s3249_s21, %s3933_s21  }
  0x11   : > { %s2227_s28 = sadd.s32 4294967294, %s3171_s26   ;;  %p207_p0 = scmp.ne.s32.totalorder %s3159_s23, %s3155_s22 }
  0x12   : > { %p208_p1 = scmp.eq.s32.totalorder %s3171_s26, 0  ;;  %p213_p2 = scmp.ne.s32.totalorder %s3155_s22, %s3151_s21 }
  0x13   : > { %p3866_p3 = scmp.eq.s32.totalorder %s3280_s27, 0  ;;  %p345_p4 = scmp.eq.s32.totalorder %s3280_s27, 2 }
  0x14   : > { %p3291_p5 = por %p208_p1, %p207_p0  ;;  %p351_p6 = scmp.eq.s32.totalorder %s2227_s28, 2 }
  0x15   : > { %p3297_p7 = por %p3866_p3, %p213_p2  ;;  %p3301_p8 = por %p345_p4, %p207_p0 }
  0x16   : > { %p3305_p9 = por %p351_p6, %p213_p2  ;;  %p2228_p10 = scmp.ge.s32.totalorder %s3171_s26, 1 }
  0x17   : > { %s3894_s13 = scalar_select %p3297_p7, 1, 0 }
  0x18   : > { %s3895_s14 = scalar_select %p3301_p8, 1, 0 }
  0x19   : > { %s3897_s15 = scalar_select %p3305_p9, 1, 0 }
  0x1a   : > { %3896 = sst [smem:[#allocation16_spill]] %s3895_s14  ;;  %p358_p11 = scmp.lt.s32.totalorder %s3171_s26, 4 }
  0x1b   : > { %3898 = sst [smem:[#allocation17_spill]] %s3897_s15  ;;  %s3173_s17 = smov [#allocation2]  }
  0x1c   : > { %p3311_p12 = pnand %p2228_p10, %p358_p11  ;;  %s373_s18 = sshll.u32 %s3173_s17, 4  ;;  %s3315_s18 = int_to_ptr.vmem [resolvable:$true] %s373_s18 }
  0x1d   : > { %p2876_p0 = scmp.lt.s32.totalorder %s3171_s26, 3  ;;  %s39_s28 = sadd.s32 1, %s3167_s25 }
  0x1e   : > { %s3899_s16 = scalar_select %p3311_p12, 1, 0 }
  0x1f   : > { %p2853_p13 = pneg %p3311_p12  ;;  %p3328_p2 = pnand %p2876_p0, %p3291_p5 }
  0x20   : > { %p3333_p4 = scmp.ge.s32.totalorder %s39_s28, 3  ;;  %s3903_s2 = sld [smem:[#allocation20_spill]] }
  0x21   : > { %p3322_p1 = pnand %p2853_p13, %p3866_p3 }
  0x22   : > { %s3901_s20 = scalar_select %p3328_p2, 1, 0 }
  0x23   : > { %s3900_s19 = scalar_select %p3322_p1, 1, 0 }
  0x24   : > { %p3872_p10 = pneg %p3322_p1 }
  0x26   : > { %s2935_s21 = scalar_lea.hbm %s3903_s2, 256 }
  0x27   : > { %p2936_p6 = scmp.ne.s32.totalorder %s3903_s2, %s2935_s21  ;;  %p2942_p13 = scmp.lt.u32.totalorder %s2935_s21, %s3903_s2 }
  0x29   : > { %p2938_p5 = pnand %p3872_p10, %p2936_p6 }
  0x2b   : > { %p2939_p11 = pneg %p2938_p5 }
  0x2d   : > { %p2944_p0 = pnand %p2942_p13, %p2939_p11 }
  0x2f   : > { %2947 = shalt.err (!%p2944_p0)
}
  0x30   : > { %s2948_s29 = scalar_lea.vmem %s3315_s18, 256  ;;  %p2956_p7 = scmp.lt.s32.totalorder %s3315_s18, %s3315_s18 }
  0x31   : > { %p2949_p3 = scmp.ne.s32.totalorder %s3315_s18, %s2948_s29  ;;  %p2957_p6 = scmp.lt.s32.totalorder %s2948_s29, %s2948_s29 }
  0x33   : > { %p2951_p9 = pnand %p2949_p3, %p3872_p10  ;;  %p2958_p5 = por %p2957_p6, %p2956_p7 }
  0x35   : > { %p2952_p8 = pneg %p2951_p9 }
  0x37   : > { %p2959_p12 = pnand %p2958_p5, %p2952_p8 }
  0x39   : > { %2962 = shalt.err (!%p2959_p12)
}
  0x3a   : > { %s3875_s10 = smov 128   ;;  %s3879_s12 = smov 8  }
  0x3b   : > { %2856 = dma.hbm_to_vmem [thread:$0]  (!%p3322_p1), %s3903_s2, 256, %s3315_s18, [#allocation3], %s3875_s10, %s3875_s10, %s3879_s12  }
  0x3c   : > { %s420_s15 = sand.u32 1, %s3171_s26   ;;  %s3939_s28 = smov (%p3333_p4, %s39_s28), 0 }
  0x3d   : > { %s3373_s30 = sand.u32 1, %s3159_s23   ;;  %s197_s29 = ssub.s32 %s3167_s25, %s3939_s28 }
  0x3e   : > { %s2232_s6 = sshll.u32 %s3373_s30, 8  ;;  %p198_p3 = scmp.eq.s32.totalorder %s197_s29, 0 }
  0x3f   : > { %s2280_s11 = sshll.u32 %s3167_s25, 12  ;;  %s424_s5 = scalar_lea.vmem [#allocation7], %s2232_s6 }
  0x40   : > { %s431_s3 = sshll.u32 %s424_s5, 4  ;;  %s3904_s1 = sadd.s32 1, %s3159_s23  ;;  %s3389_s3 = int_to_ptr.vmem [resolvable:$true] %s431_s3 }
  0x41   : > { %s3382_s0 = scalar_select %p198_p3, %s3159_s23, %s3904_s1  }
  0x42   : > { %s3387_s14 = scalar_lea.hbm %s3855_s7, %s2280_s11  ;;  %s3391_s17 = scalar_lea.sflag [#allocation3], %s420_s15 }
  0x43   : > { %s2963_s29 = scalar_lea.hbm %s3387_s14, 4096  ;;  %p3397_p8 = pneg %p3328_p2 }
  0x44   : > { %p2964_p7 = scmp.ne.s32.totalorder %s3387_s14, %s2963_s29  ;;  %s2968_s11 = scalar_lea.hbm %s3855_s7, 12288 }
  0x45   : > { %s3905_s5 = scalar_select %p3397_p8, 1, 0 }
  0x46   : > { %p2966_p9 = pnand %p3397_p8, %p2964_p7  ;;  %p2969_p4 = scmp.lt.u32.totalorder %s3387_s14, %s3855_s7 }
  0x47   : > { %p2970_p11 = scmp.lt.u32.totalorder %s2968_s11, %s2963_s29  ;;  %p2972_p0 = scmp.lt.u32.totalorder %s2963_s29, %s3387_s14 }
  0x48   : > { %p2967_p12 = pneg %p2966_p9 }
  0x49   : > { %p2971_p13 = por %p2970_p11, %p2969_p4 }
  0x4b   : > { %p2973_p6 = por %p2972_p0, %p2971_p13 }
  0x4d   : > { %p2974_p5 = pnand %p2973_p6, %p2967_p12 }
  0x4f   : > { %2977 = shalt.err (!%p2974_p5)
}
  0x50   : > { %s2978_s15 = scalar_lea.vmem %s3389_s3, 4096  ;;  %s3176_s1 = smov [#allocation7]  }
  0x51   : > { %p2979_p3 = scmp.ne.s32.totalorder %s3389_s3, %s2978_s15  ;;  %s2983_s6 = sshll.u32 %s3176_s1, 4  ;;  %s2984_s6 = int_to_ptr.vmem [resolvable:$false] %s2983_s6 }
  0x52   : > { %s2985_s21 = scalar_lea.vmem %s2984_s6, 8192  ;;  %p2986_p10 = scmp.lt.s32.totalorder %s3389_s3, %s2984_s6 }
  0x53   : > { %p2981_p7 = pnand %p2979_p3, %p3397_p8  ;;  %p2987_p1 = scmp.lt.s32.totalorder %s2985_s21, %s2978_s15 }
  0x55   : > { %p2982_p9 = pneg %p2981_p7  ;;  %p2988_p4 = por %p2987_p1, %p2986_p10 }
  0x57   : > { %p2989_p11 = pnand %p2988_p4, %p2982_p9 }
  0x59   : > { %2992 = shalt.err (!%p2989_p11)
}
  0x5a   : > { %2863 = dma.hbm_to_vmem [thread:$0]  (!%p3328_p2), %s3387_s14, 4096, %s3389_s3, %s3391_s17, %s3875_s10, %s3875_s10, %s3879_s12  }
  0x5b   : > { %s2235_s29 = sshll.u32 %s3167_s25, 4  ;;  %s444_s1 = scalar_lea.vmem [#allocation8], %s3373_s30 }
  0x5c   : > { %s3428_s15 = scalar_lea.hbm %s3856_s8, %s2235_s29  ;;  %s451_s6 = sshll.u32 %s444_s1, 4  ;;  %s452_s6 = int_to_ptr.vmem [resolvable:$true] %s451_s6 }
  0x5d   : > { %s2993_s21 = scalar_lea.hbm %s3428_s15, 16  ;;  %s2998_s14 = scalar_lea.hbm %s3856_s8, 48 }
  0x5e   : > { %p2994_p1 = scmp.ne.s32.totalorder %s3428_s15, %s2993_s21  ;;  %p2999_p13 = scmp.lt.u32.totalorder %s3428_s15, %s3856_s8 }
  0x5f   : > { %p3000_p0 = scmp.lt.u32.totalorder %s2998_s14, %s2993_s21  ;;  %p3002_p5 = scmp.lt.u32.totalorder %s2993_s21, %s3428_s15 }
  0x60   : > { %p2996_p10 = pnand %p2994_p1, %p3397_p8 }
  0x61   : > { %p3001_p6 = por %p3000_p0, %p2999_p13 }
  0x62   : > { %p2997_p12 = pneg %p2996_p10 }
  0x63   : > { %p3003_p3 = por %p3002_p5, %p3001_p6 }
  0x65   : > { %p3004_p7 = pnand %p3003_p3, %p2997_p12 }
  0x67   : > { %3007 = shalt.err (!%p3004_p7)
}
  0x68   : > { %s3008_s29 = scalar_lea.vmem %s452_s6, 16  ;;  %s3177_s18 = smov [#allocation8]  }
  0x69   : > { %p3009_p9 = scmp.ne.s32.totalorder %s452_s6, %s3008_s29  ;;  %s3013_s1 = sshll.u32 %s3177_s18, 4  ;;  %s3014_s1 = int_to_ptr.vmem [resolvable:$false] %s3013_s1 }
  0x6a   : > { %s3015_s2 = scalar_lea.vmem %s3014_s1, 32  ;;  %p3016_p1 = scmp.lt.s32.totalorder %s452_s6, %s3014_s1 }
  0x6b   : > { %p3011_p4 = pnand %p3009_p9, %p3397_p8  ;;  %p3017_p10 = scmp.lt.s32.totalorder %s3015_s2, %s3008_s29 }
  0x6d   : > { %p3012_p11 = pneg %p3011_p4  ;;  %p3018_p2 = por %p3017_p10, %p3016_p1 }
  0x6f   : > { %p3019_p0 = pnand %p3018_p2, %p3012_p11 }
  0x71   : > { %3022 = shalt.err (!%p3019_p0)
}
  0x72   : > { %p3906_p13 = scmp.ne.s32.totalorder %s3901_s20, 0  ;;  %s3178_s10 = smov [#allocation5]  }
  0x73   : > { %s389_s21 = sshll.u32 %s3178_s10, 4  ;;  %s2236_s3 = sshll.u32 %s3373_s30, 7  ;;  %s390_s21 = int_to_ptr.vmem [resolvable:$true] %s389_s21 }
  0x74   : > { %2866 = dma.hbm_to_vmem [thread:$0]  (!%p3906_p13), %s3428_s15, 16, %s452_s6, %s3391_s17  }
  0x75   : > { %s3023_s18 = scalar_lea.hbm %s3852_s4, 2048  ;;  %p3907_p12 = scmp.ne.s32.totalorder %s3900_s19, 0 }
  0x76   : > { %p3024_p2 = scmp.ne.s32.totalorder %s3852_s4, %s3023_s18  ;;  %p3030_p7 = scmp.lt.u32.totalorder %s3023_s18, %s3852_s4 }
  0x77   : > { %p3908_p6 = pneg %p3907_p12 }
  0x79   : > { %p3026_p5 = pnand %p3024_p2, %p3908_p6 }
  0x7b   : > { %p3027_p3 = pneg %p3026_p5 }
  0x7d   : > { %p3032_p9 = pnand %p3030_p7, %p3027_p3 }
  0x7f   : > { %3035 = shalt.err (!%p3032_p9)
}
  0x80   : > { %s3036_s30 = scalar_lea.vmem %s390_s21, 2048  ;;  %p3909_p11 = pmov %p3908_p6 }
  0x81   : > { %p3037_p4 = scmp.ne.s32.totalorder %s390_s21, %s3036_s30  ;;  %p3044_p0 = scmp.lt.s32.totalorder %s390_s21, %s390_s21 }
  0x82   : > { %p3045_p13 = scmp.lt.s32.totalorder %s3036_s30, %s3036_s30 }
  0x83   : > { %p3039_p1 = pnand %p3037_p4, %p3909_p11 }
  0x84   : > { %p3046_p8 = por %p3045_p13, %p3044_p0 }
  0x85   : > { %p3040_p10 = pneg %p3039_p1 }
  0x87   : > { %p3047_p2 = pnand %p3046_p8, %p3040_p10 }
  0x89   : > { %3050 = shalt.err (!%p3047_p2)
}
  0x8a   : > { %s3910_s15 = smov 8   ;;  %s3911_s6 = smov 128  }
  0x8b   : > { %2859 = dma.hbm_to_vmem [thread:$0]  (!%p3907_p12), %s3852_s4, 2048, %s390_s21, [#allocation6], %s3911_s6, %s3911_s6, %s3910_s15  }
  0x8c   : > { %s2281_s14 = sshll.u32 %s3167_s25, 11  ;;  %s462_s11 = scalar_lea.vmem [#allocation9], %s2236_s3 }
  0x8d   : > { %s469_s18 = sshll.u32 %s462_s11, 4  ;;  %s3477_s2 = scalar_lea.hbm %s3857_s9, %s2281_s14  ;;  %s3479_s18 = int_to_ptr.vmem [resolvable:$true] %s469_s18 }
  0x8e   : > { %s3051_s19 = scalar_lea.hbm %s3477_s2, 2048  ;;  %p3912_p13 = scmp.ne.s32.totalorder %s3905_s5, 0 }
  0x8f   : > { %p3052_p8 = scmp.ne.s32.totalorder %s3477_s2, %s3051_s19  ;;  %s3056_s3 = scalar_lea.hbm %s3857_s9, 6144 }
  0x90   : > { %p3057_p12 = scmp.lt.u32.totalorder %s3477_s2, %s3857_s9  ;;  %p3058_p3 = scmp.lt.u32.totalorder %s3056_s3, %s3051_s19 }
  0x91   : > { %p3054_p6 = pnand %p3052_p8, %p3912_p13  ;;  %p3060_p9 = scmp.lt.u32.totalorder %s3051_s19, %s3477_s2 }
  0x92   : > { %p3059_p7 = por %p3058_p3, %p3057_p12 }
  0x93   : > { %p3055_p5 = pneg %p3054_p6 }
  0x94   : > { %p3061_p4 = por %p3060_p9, %p3059_p7 }
  0x96   : > { %p3062_p11 = pnand %p3061_p4, %p3055_p5 }
  0x98   : > { %3065 = shalt.err (!%p3062_p11)
}
  0x99   : > { %s3066_s14 = scalar_lea.vmem %s3479_s18, 2048  ;;  %s3179_s11 = smov [#allocation9]  }
  0x9a   : > { %p3067_p1 = scmp.ne.s32.totalorder %s3479_s18, %s3066_s14  ;;  %s3071_s1 = sshll.u32 %s3179_s11, 4  ;;  %s3072_s1 = int_to_ptr.vmem [resolvable:$false] %s3071_s1 }
  0x9b   : > { %s3073_s29 = scalar_lea.vmem %s3072_s1, 4096  ;;  %p3074_p2 = scmp.lt.s32.totalorder %s3479_s18, %s3072_s1 }
  0x9c   : > { %p3069_p10 = pnand %p3067_p1, %p3912_p13  ;;  %p3075_p8 = scmp.lt.s32.totalorder %s3073_s29, %s3066_s14 }
  0x9e   : > { %p3070_p0 = pneg %p3069_p10  ;;  %p3076_p6 = por %p3075_p8, %p3074_p2 }
  0xa0   : > { %p3077_p12 = pnand %p3076_p6, %p3070_p0 }
  0xa2   : > { %3080 = shalt.err (!%p3077_p12)
}
  0xa3   : > { %p3913_p5 = scmp.ne.s32.totalorder %s3901_s20, 0  ;;  %p3914_p13 = scmp.ne.s32.totalorder %s3899_s16, 0 }
  0xa4   : > { %p3915_p3 = scmp.eq.s32.totalorder (!%p3914_p13), %s3280_s27, 0 }
  0xa5   : > { %2869 = dma.hbm_to_vmem [thread:$0]  (!%p3913_p5), %s3477_s2, 2048, %s3479_s18, %s3391_s17, %s3911_s6, %s3911_s6, %s3910_s15  }
  0xa6   : > { %497 = sbr.rel (%p3914_p13) target bundleno = 1323 (0x52b), region = 68 }
  0xad   : > { %3134 = dma.done.wait (%p3915_p3), [#allocation3], 256   ;;  %p3916_p7 = pmov %p3915_p3 }
  0xae   : > { %p3917_p9 = pmov %p3915_p3 }
  0xaf   : > { %3136 = vsyncadd (%p3916_p7), [#allocation3], 4294967040 }
  0xb0   : > { %3138 = dma.done.wait (%p3917_p9), [#allocation6], 2048   ;;  %p3918_p4 = pmov %p3915_p3 }
  0xb1   : > { %s507_s20 = sand.u32 1, %s3280_s27   ;;  %s3518_s17 = sand.u32 1, %s3155_s22  }
  0xb2   : > { %3140 = vsyncadd (%p3918_p4), [#allocation6], 4294965248  ;;  %s2242_s16 = sshll.u32 %s3518_s17, 8  ;;  %s508_s5 = scalar_lea.sflag [#allocation3], %s507_s20 }
  0xb3   : > { %s3521_s15 = scalar_lea.vmem [#allocation7], %s2242_s16  ;;  %p3919_p11 = scmp.ne.s32.totalorder %s3894_s13, 0 }
  0xb5   : > { %3142 = dma.done.wait (%p3919_p11), %s508_s5, 6160  }
  0xb6   : > { %3144 = vsyncadd (%p3919_p11), %s508_s5, 4294961136  ;;  %s2245_s6 = sshll.u32 %s3163_s24, 3  ;;  %vm629_vm0 = vcmask 130048   ;;  %s3920_s19 = sld [smem:[#allocation18_spill]]  ;;  %v620_v0 = vld [vmem:[#allocation2] sm:$0xff]  ;;  %v621_v1 = vld [vmem:[#allocation2 + $0x8] sm:$0xff] }
  0xb7   : > { %p596_p1 = scmp.lt.s32.totalorder %s2245_s6, 23  ;;  %v2663_v3 = vpack.c.bf16 %v621_v1, %v620_v0  ;;  %s3921_s3 = sld [smem:[#allocation19_spill]]  ;;  %vm810_vm1 = vcmask 64512   ;;  %v761_v38 = vld [vmem:[#allocation5] sm:$0xff]  ;;  %v762_v39 = vld [vmem:[#allocation5 + $0x8] sm:$0xff]  ;;  %v763_v44 = vld [vmem:[#allocation5 + $0x10] sm:$0xff] }
  0xb8   : > { %s3922_s14 = sld [smem:[#allocation21_spill]]  ;;  %s3923_s16 = sld [smem:[#allocation22_spill]]  ;;  %v2699_v43 = vpack.c.bf16 %v762_v39, %v761_v38  ;;  %v764_v45 = vld [vmem:[#allocation5 + $0x18] sm:$0xff]  ;;  %v765_v50 = vld [vmem:[#allocation5 + $0x20] sm:$0xff]  ;;  %v766_v51 = vld [vmem:[#allocation5 + $0x28] sm:$0xff]  ;;  %vm1819_vm2 = vcmask 1041409  }
  0xb9   : > { %s3941_s6 = smov (!%p596_p1, %s2245_s6), 23  ;;  %2664 = vmatprep.subr.bf16.mxu0 %v2663_v3  ;;  %2819 = vmatprep.subr.bf16.mxu1 %v2663_v3  ;;  %v2703_v49 = vpack.c.bf16 %v764_v45, %v763_v44  ;;  %v2707_v55 = vpack.c.bf16 %v766_v51, %v765_v50  ;;  %v767_v56 = vld [vmem:[#allocation5 + $0x30] sm:$0xff]  ;;  %v768_v57 = vld [vmem:[#allocation5 + $0x38] sm:$0xff]  ;;  %v769_v62 = vld [vmem:[#allocation5 + $0x40] sm:$0xff]  ;;  %p602_p10 = scmp.lt.s32.totalorder %s3163_s24, 2  ;;  %vm1821_vm3 = vcmask 1042434  }
  0xba   : > { %s2246_s18 = sshll.u32 %s3941_s6, 3  ;;  %2666 = vmatpush3.bf16.msra.mxu0 %v2663_v3  ;;  %2820 = vmatpush3.bf16.msra.mxu1 %v2663_v3  ;;  %v2711_v61 = vpack.c.bf16 %v768_v57, %v767_v56  ;;  %v770_v63 = vld [vmem:[#allocation5 + $0x48] sm:$0xff]  ;;  %v772_v3 = vld [vmem:[#allocation5 + $0x58] sm:$0xff]  ;;  %v1834_v57 = vld [vmem:[%s3521_s15] sm:$0xff]  ;;  %vm1823_vm4 = vcmask 1043459   ;;  %vm1825_vm5 = vcmask 1044484  }
  0xbb   : > { %v2715_v1 = vpack.c.bf16 %v770_v63, %v769_v62  ;;  %v1836_v63 = vld [vmem:[%s3521_s15 + $0x10] sm:$0xff]  ;;  %s3754_s29 = scalar_select %p602_p10, %s3163_s24, 2  ;;  %vm1827_vm6 = vcmask 1045509   ;;  %vm1829_vm7 = vcmask 1046534   ;;  %vm1831_vm8 = vcmask 1047559  }
  0xbc   : > { %s599_s21 = scalar_lea.vmem %s3920_s19, %s2246_s18  ;;  %s3924_s18 = sld [smem:[#allocation25_spill]]  ;;  %vm3181_vm9 = vmmov 0  }
  0xbd   : > { %v612_v2 = vld [vmem:[%s599_s21] sm:$0xff]  ;;  %v614_v4 = vld [vmem:[%s599_s21 + $0x10] sm:$0xff]  ;;  %v613_v5 = vld [vmem:[%s599_s21 + $0x8] sm:$0xff]  ;;  %s2247_s20 = sshll.u32 %s3754_s29, 3  ;;  %s519_s30 = scalar_lea.vmem [#allocation8], %s3518_s17 }
  0xbe   : > { %2444 = vmatprep.mubr.msk.f32.mxu0 %vm629_vm0, %v612_v2  ;;  %2447 = vmatprep.mubr.msk.f32.mxu1 %vm629_vm0, %v614_v4  ;;  %v615_v6 = vld [vmem:[%s599_s21 + $0x18] sm:$0xff]  ;;  %v616_v7 = vld [vmem:[%s599_s21 + $0x20] sm:$0xff]  ;;  %v617_v8 = vld [vmem:[%s599_s21 + $0x28] sm:$0xff]  ;;  %s3926_s12 = sld [smem:[#allocation16_spill]]  ;;  %s2244_s10 = sshll.u32 %s3518_s17, 3 }
  0xbf   : > { %2445 = vmatmul.mubr.msk.f32.vlgmr.msra.gmra.mrb[0].mxu0 %vm629_vm0, %v613_v5  ;;  %2448 = vmatmul.mubr.msk.f32.vlgmr.msra.gmra.mrb[0].mxu1 %vm629_vm0, %v615_v6  ;;  %v618_v9 = vld [vmem:[%s599_s21 + $0x30] sm:$0xff]  ;;  %v619_v10 = vld [vmem:[%s599_s21 + $0x38] sm:$0xff]  ;;  %v3542_v11 = vld [vmem:[%s3921_s3] sm:$0xff]  ;;  %s2243_s21 = sshll.u32 %s3518_s17, 7  ;;  %s3927_s1 = sld [smem:[#allocation24_spill]] }
  0xc0   : > { %2450 = vmatprep.mubr.msk.f32.mxu1 %vm629_vm0, %v616_v7  ;;  %2483 = vmatprep.mubr.msk.f32.mxu0 %vm810_vm1, %v3542_v11  ;;  %v2248_v12 = vld [vmem:[%s3922_s14] ss:$0 sm:$0xff]  ;;  %v3556_v18 = vld [vmem:[%s3921_s3 + $0x8] sm:$0xff]  ;;  %v779_v30 = vld [vmem:[%s3923_s16 + $0x10] sm:$0xff]  ;;  %s3765_s13 = scalar_lea.vmem [#allocation9], %s2243_s21  ;;  %s2277_s5 = sshll.u32 %s3163_s24, 7 }
  0xc1   : > { %v777_v28 = vld [vmem:[%s3923_s16] sm:$0xff]  ;;  %v778_v29 = vld [vmem:[%s3923_s16 + $0x8] sm:$0xff]  ;;  %v780_v31 = vld [vmem:[%s3923_s16 + $0x18] sm:$0xff]  ;;  %s593_s6 = scalar_lea.vmem [#allocation10], %s2244_s10  ;;  %s3928_s19 = sld [smem:[#allocation26_spill]] }
  0xc2   : > { %v2667_v33 = vpack.c.bf16 %v778_v29, %v777_v28  ;;  %v2671_v34 = vpack.c.bf16 %v780_v31, %v779_v30  ;;  %v781_v35 = vld [vmem:[%s3923_s16 + $0x20] sm:$0xff]  ;;  %v782_v36 = vld [vmem:[%s3923_s16 + $0x28] sm:$0xff]  ;;  %v783_v41 = vld [vmem:[%s3923_s16 + $0x30] sm:$0xff]  ;;  %s611_s2 = scalar_lea.vmem %s3924_s18, %s2247_s20  ;;  %s2055_s18 = sshll.u32 %s593_s6, 4  ;;  %s3802_s18 = int_to_ptr.vmem [resolvable:$true] %s2055_s18 }
  0xc3   : > { %2451 = vmatmul.mubr.msk.f32.gmra.mrb[2].mxu1 %vm629_vm0, %v617_v8  ;;  %v2675_v40 = vpack.c.bf16 %v782_v36, %v781_v35  ;;  %v784_v42 = vld [vmem:[%s3923_s16 + $0x38] sm:$0xff]  ;;  %v785_v47 = vld [vmem:[%s3923_s16 + $0x40] sm:$0xff]  ;;  %v786_v48 = vld [vmem:[%s3923_s16 + $0x48] sm:$0xff]  ;;  %s2041_s21 = scalar_lea.sflag [#allocation4], %s3518_s17  ;;  %s3183_s24 = smov [#allocation10]  }
  0xc4   : > { %2453 = vmatprep.mubr.msk.f32.mxu1 %vm629_vm0, %v618_v9  ;;  %v2679_v46 = vpack.c.bf16 %v784_v42, %v783_v41  ;;  %v2683_v52 = vpack.c.bf16 %v786_v48, %v785_v47  ;;  %v787_v53 = vld [vmem:[%s3923_s16 + $0x50] sm:$0xff]  ;;  %v788_v54 = vld [vmem:[%s3923_s16 + $0x58] sm:$0xff]  ;;  %v789_v59 = vld [vmem:[%s3923_s16 + $0x60] sm:$0xff]  ;;  %p3929_p2 = scmp.ne.s32.totalorder %s3926_s12, 0 }
  0xc5   : > { %v2687_v58 = vpack.c.bf16 %v788_v54, %v787_v53  ;;  %v790_v60 = vld [vmem:[%s3923_s16 + $0x68] sm:$0xff]  ;;  %v771_v2 = vld [vmem:[#allocation5 + $0x50] sm:$0xff]  ;;  %v773_v5 = vld [vmem:[#allocation5 + $0x60] sm:$0xff]  ;;  %s604_s20 = scalar_lea.vmem %s3927_s1, %s3754_s29  ;;  %s3081_s29 = scalar_lea.vmem %s3802_s18, 128 }
  0xc6   : > { %v2691_v0 = vpack.c.bf16 %v790_v60, %v789_v59  ;;  %v2719_v4 = vpack.c.bf16 %v772_v3, %v771_v2  ;;  %v774_v6 = vld [vmem:[#allocation5 + $0x68] sm:$0xff]  ;;  %v775_v8 = vld [vmem:[#allocation5 + $0x70] sm:$0xff]  ;;  %v776_v9 = vld [vmem:[#allocation5 + $0x78] sm:$0xff]  ;;  %p3082_p0 = scmp.ne.s32.totalorder %s3802_s18, %s3081_s29 }
  0xc7   : > { %2454 = vmatmul.mubr.msk.f32.gmra.mrb[4].mxu1 %vm629_vm0, %v619_v10  ;;  %v2723_v7 = vpack.c.bf16 %v774_v6, %v773_v5  ;;  %v2727_v10 = vpack.c.bf16 %v776_v9, %v775_v8  ;;  %v803_v28 = vld [vmem:[%s3923_s16 + $0xd0] sm:$0xff]  ;;  %v804_v29 = vld [vmem:[%s3923_s16 + $0xd8] sm:$0xff]  ;;  %v806_v31 = vld [vmem:[%s3923_s16 + $0xe8] sm:$0xff] }
  0xc8   : > { %2458 = vmatprep.mubr.msk.f32.mxu1 %vm810_vm1, %v3542_v11  ;;  %v2751_v30 = vpack.c.bf16 %v804_v29, %v803_v28  ;;  %v791_v35 = vld [vmem:[%s3923_s16 + $0x70] sm:$0xff]  ;;  %v792_v36 = vld [vmem:[%s3923_s16 + $0x78] sm:$0xff]  ;;  %v1852_v60 = vld [vmem:[%s3521_s15 + $0x90] sm:$0xff]  ;;  %p3083_p8 = pnand %p3082_p0, %p3929_p2 }
  0xc9   : > { %v1850_v54 = vld [vmem:[%s3521_s15 + $0x80] sm:$0xff]  ;;  %v1855_v3 = vld [vmem:[%s3521_s15 + $0xa8] sm:$0xff]  ;;  %v1856_v8 = vld [vmem:[%s3521_s15 + $0xb0] sm:$0xff] }
  0xca   : > { %v1854_v2 = vld [vmem:[%s3521_s15 + $0xa0] sm:$0xff]  ;;  %v1839_v6 = vld [vmem:[%s3521_s15 + $0x28] sm:$0xff]  ;;  %v1857_v9 = vld [vmem:[%s3521_s15 + $0xb8] sm:$0xff]  ;;  %p3084_p6 = pneg %p3083_p8 }
  0xcb   : > { %v1838_v5 = vld [vmem:[%s3521_s15 + $0x20] sm:$0xff]  ;;  %v1863_v29 = vld [vmem:[%s3521_s15 + $0xe8] sm:$0xff] }
  0xcc   : > { %v1862_v28 = vld [vmem:[%s3521_s15 + $0xe0] sm:$0xff] }
 0x192   : > { %v2446_v13 = vpop.f32.mrb[0].mxu0  ;;  %v2449_v14 = vpop.f32.mrb[0].mxu1 }
 0x193   : > { %v720_v15 = vpop.f32.mrb[1].mxu0  ;;  %v730_v16 = vpop.f32.mrb[1].mxu1  ;;  %v3558_v19 = vadd.f32 %v2446_v13, %v2248_v12  ;;  %v3572_v24 = vadd.f32 %v2449_v14, %v2248_v12  ;;  %v795_v14 = vld [vmem:[%s3923_s16 + $0x90] sm:$0xff] }
 0x194   : > { %v3551_v17 = vadd.f32 %v2248_v12, %v720_v15  ;;  %v3561_v20 = vadd.f32 %v2248_v12, %v730_v16  ;;  %v796_v15 = vld [vmem:[%s3923_s16 + $0x98] sm:$0xff] }
 0x195   : > { %v2735_v16 = vpack.c.bf16 %v796_v15, %v795_v14  ;;  %v1858_v14 = vld [vmem:[%s3521_s15 + $0xc0] sm:$0xff]  ;;  %v1859_v15 = vld [vmem:[%s3521_s15 + $0xc8] sm:$0xff] }
 0x196   : > { %2456 = vmatprep.subr.mxu1 %v3551_v17  ;;  %v2452_v21 = vpop.f32.mrb[2].mxu1 }
 0x197   : > { %2457 = vmatpush3.msra.mxu1 %v3551_v17  ;;  %v3564_v22 = vadd.f32 %v2452_v21, %v2248_v12  ;;  %v740_v23 = vpop.f32.mrb[3].mxu1 }
 0x198   : > { %2459 = vmatmul.mubr.msk.f32.vlgmr.msra.gmra.mrb[6].mxu1 %vm810_vm1, %v3556_v18  ;;  %2461 = vmatprep.subr.mxu1 %v3558_v19  ;;  %v3599_v32 = vadd.f32 %v2248_v12, %v740_v23  ;;  %v799_v23 = vld [vmem:[%s3923_s16 + $0xb0] sm:$0xff] }
 0x199   : > { %2462 = vmatpush3.msra.mxu1 %v3558_v19  ;;  %2463 = vmatprep.mubr.msk.f32.mxu1 %vm810_vm1, %v3542_v11 }
 0x19a   : > { %2466 = vmatprep.subr.mxu1 %v3561_v20  ;;  %v2455_v25 = vpop.f32.mrb[4].mxu1  ;;  %2481 = vmatprep.subr.mxu0 %v3564_v22 }
 0x19b   : > { %v3576_v26 = vadd.f32 %v2455_v25, %v2248_v12  ;;  %v750_v27 = vpop.f32.mrb[5].mxu1  ;;  %2482 = vmatpush3.msra.mxu0 %v3564_v22  ;;  %v800_v25 = vld [vmem:[%s3923_s16 + $0xb8] sm:$0xff] }
 0x19c   : > { %2464 = vmatmul.mubr.msk.f32.vlgmr.msra.gmra.mrb[8].mxu1 %vm810_vm1, %v3556_v18  ;;  %2484 = vmatmul.mubr.msk.f32.vlgmr.msra.gmra.mrb[2].mxu0 %vm810_vm1, %v3556_v18  ;;  %v3618_v37 = vadd.f32 %v2248_v12, %v750_v27  ;;  %v794_v12 = vld [vmem:[%s3923_s16 + $0x88] sm:$0xff] }
 0x19d   : > { %2467 = vmatpush3.msra.mxu1 %v3561_v20  ;;  %2468 = vmatprep.mubr.msk.f32.mxu1 %vm810_vm1, %v3542_v11  ;;  %v802_v27 = vld [vmem:[%s3923_s16 + $0xc8] sm:$0xff] }
 0x19e   : > { %2471 = vmatprep.subr.mxu1 %v3572_v24  ;;  %2491 = vmatprep.subr.mxu0 %v3576_v26 }
 0x19f   : > { %2492 = vmatpush3.msra.mxu0 %v3576_v26  ;;  %2493 = vmatprep.mubr.msk.f32.mxu0 %vm810_vm1, %v3542_v11 }
 0x1a0   : > { %2469 = vmatmul.mubr.msk.f32.vlgmr.msra.gmra.mrb[10].mxu1 %vm810_vm1, %v3556_v18  ;;  %2494 = vmatmul.mubr.msk.f32.vlgmr.msra.gmra.mrb[4].mxu0 %vm810_vm1, %v3556_v18 }
 0x1a1   : > { %2472 = vmatpush3.msra.mxu1 %v3572_v24  ;;  %2473 = vmatprep.mubr.msk.f32.mxu1 %vm810_vm1, %v3542_v11 }
 0x1a2   : > { %2476 = vmatprep.subr.mxu1 %v3599_v32  ;;  %2668 = vmatprep.subr.bf16.mxu0 %v2667_v33 }
 0x1a3   : > { %2670 = vmatpush3.bf16.msra.mxu0 %v2667_v33  ;;  %v807_v33 = vld [vmem:[%s3923_s16 + $0xf0] sm:$0xff] }
 0x1a4   : > { %2474 = vmatmul.mubr.msk.f32.vlgmr.msra.gmra.mrb[12].mxu1 %vm810_vm1, %v3556_v18  ;;  %2672 = vmatprep.subr.bf16.mxu0 %v2671_v34 }
 0x1a5   : > { %2477 = vmatpush3.msra.mxu1 %v3599_v32  ;;  %2478 = vmatprep.mubr.msk.f32.mxu1 %vm810_vm1, %v3542_v11 }
 0x1a6   : > { %2486 = vmatprep.subr.mxu1 %v3618_v37 }
 0x1a7   : > { %2674 = vmatpush3.bf16.msra.mxu0 %v2671_v34 }
 0x1a8   : > { %2479 = vmatmul.mubr.msk.f32.vlgmr.msra.gmra.mrb[14].mxu1 %vm810_vm1, %v3556_v18  ;;  %2676 = vmatprep.subr.bf16.mxu0 %v2675_v40 }
 0x1a9   : > { %2487 = vmatpush3.msra.mxu1 %v3618_v37  ;;  %2488 = vmatprep.mubr.msk.f32.mxu1 %vm810_vm1, %v3542_v11  ;;  %v793_v11 = vld [vmem:[%s3923_s16 + $0x80] sm:$0xff] }
 0x1aa   : > { %2700 = vmatprep.subr.bf16.mxu1 %v2699_v43  ;;  %v2731_v13 = vpack.c.bf16 %v794_v12, %v793_v11  ;;  %v1840_v11 = vld [vmem:[%s3521_s15 + $0x30] sm:$0xff]  ;;  %v1841_v12 = vld [vmem:[%s3521_s15 + $0x38] sm:$0xff] }
 0x1ab   : > { %2678 = vmatpush3.bf16.msra.mxu0 %v2675_v40 }
 0x1ac   : > { %2489 = vmatmul.mubr.msk.f32.vlgmr.msra.gmra.mrb[16].mxu1 %vm810_vm1, %v3556_v18  ;;  %2680 = vmatprep.subr.bf16.mxu0 %v2679_v46  ;;  %v798_v18 = vld [vmem:[%s3923_s16 + $0xa8] sm:$0xff] }
 0x1ad   : > { %2702 = vmatpush3.bf16.msra.mxu1 %v2699_v43  ;;  %2572 = vmatprep.mubr.f32.mxu1 %v3551_v17  ;;  %v797_v17 = vld [vmem:[%s3923_s16 + $0xa0] sm:$0xff] }
 0x1ae   : > { %2704 = vmatprep.subr.bf16.mxu1 %v2703_v49  ;;  %v2739_v21 = vpack.c.bf16 %v798_v18, %v797_v17  ;;  %v1842_v17 = vld [vmem:[%s3521_s15 + $0x40] sm:$0xff]  ;;  %v1843_v18 = vld [vmem:[%s3521_s15 + $0x48] sm:$0xff] }
 0x1af   : > { %2682 = vmatpush3.bf16.msra.mxu0 %v2679_v46 }
 0x1b0   : > { %2684 = vmatprep.subr.bf16.mxu0 %v2683_v52 }
 0x1b1   : > { %2706 = vmatpush3.bf16.msra.mxu1 %v2703_v49 }
 0x1b2   : > { %2708 = vmatprep.subr.bf16.mxu1 %v2707_v55 }
 0x1b3   : > { %2686 = vmatpush3.bf16.msra.mxu0 %v2683_v52 }
 0x1b4   : > { %2688 = vmatprep.subr.bf16.mxu0 %v2687_v58 }
 0x1b5   : > { %2710 = vmatpush3.bf16.msra.mxu1 %v2707_v55  ;;  %v1851_v55 = vld [vmem:[%s3521_s15 + $0x88] sm:$0xff] }
 0x1b6   : > { %2712 = vmatprep.subr.bf16.mxu1 %v2711_v61  ;;  %v2763_v56 = vpack.c.bf16 %v1851_v55, %v1850_v54 }
 0x1b7   : > { %2690 = vmatpush3.bf16.msra.mxu0 %v2687_v58  ;;  %v1835_v58 = vld [vmem:[%s3521_s15 + $0x8] sm:$0xff] }
 0x1b8   : > { %2692 = vmatprep.subr.bf16.mxu0 %v2691_v0  ;;  %v2765_v59 = vpack.c.bf16 %v1835_v58, %v1834_v57 }
 0x1b9   : > { %2714 = vmatpush3.bf16.msra.mxu1 %v2711_v61  ;;  %v1853_v61 = vld [vmem:[%s3521_s15 + $0x98] sm:$0xff] }
 0x1ba   : > { %2716 = vmatprep.subr.bf16.mxu1 %v2715_v1  ;;  %v2767_v62 = vpack.c.bf16 %v1853_v61, %v1852_v60 }
 0x1bb   : > { %2694 = vmatpush3.bf16.msra.mxu0 %v2691_v0  ;;  %v1837_v0 = vld [vmem:[%s3521_s15 + $0x18] sm:$0xff] }
 0x1bd   : > { %2718 = vmatpush3.bf16.msra.mxu1 %v2715_v1  ;;  %v2769_v1 = vpack.c.bf16 %v1837_v0, %v1836_v63 }
 0x1be   : > { %2720 = vmatprep.subr.bf16.mxu1 %v2719_v4 }
 0x1c1   : > { %2722 = vmatpush3.bf16.msra.mxu1 %v2719_v4  ;;  %v2771_v4 = vpack.c.bf16 %v1855_v3, %v1854_v2 }
 0x1c2   : > { %2724 = vmatprep.subr.bf16.mxu1 %v2723_v7 }
 0x1c5   : > { %2726 = vmatpush3.bf16.msra.mxu1 %v2723_v7  ;;  %v2773_v7 = vpack.c.bf16 %v1839_v6, %v1838_v5 }
 0x1c6   : > { %2728 = vmatprep.subr.bf16.mxu1 %v2727_v10 }
 0x1c9   : > { %2730 = vmatpush3.bf16.msra.mxu1 %v2727_v10  ;;  %v2775_v10 = vpack.c.bf16 %v1857_v9, %v1856_v8 }
 0x1ca   : > { %2732 = vmatprep.subr.bf16.mxu1 %v2731_v13 }
 0x1cc   : > { %2573 = vmatmul.mubr.f32.vlgmr.msra.gmra.mrb[18].mxu1 %v3558_v19  ;;  %v2743_v19 = vpack.c.bf16 %v800_v25, %v799_v23  ;;  %v1860_v23 = vld [vmem:[%s3521_s15 + $0xd0] sm:$0xff]  ;;  %v1861_v25 = vld [vmem:[%s3521_s15 + $0xd8] sm:$0xff] }
 0x1cd   : > { %2575 = vmatprep.mubr.f32.mxu1 %v3561_v20  ;;  %2734 = vmatpush3.bf16.msra.mxu1 %v2731_v13  ;;  %v801_v20 = vld [vmem:[%s3923_s16 + $0xc0] sm:$0xff]  ;;  %v2777_v13 = vpack.c.bf16 %v1841_v12, %v1840_v11 }
 0x1ce   : > { %2736 = vmatprep.subr.bf16.mxu1 %v2735_v16 }
 0x1d0   : > { %2576 = vmatmul.mubr.f32.gmra.mrb[20].mxu1 %v3572_v24  ;;  %v2747_v24 = vpack.c.bf16 %v802_v27, %v801_v20  ;;  %v1844_v20 = vld [vmem:[%s3521_s15 + $0x50] sm:$0xff]  ;;  %v1845_v27 = vld [vmem:[%s3521_s15 + $0x58] sm:$0xff] }
 0x1d1   : > { %2578 = vmatprep.mubr.f32.mxu1 %v3599_v32  ;;  %2738 = vmatpush3.bf16.msra.mxu1 %v2735_v16  ;;  %v2779_v16 = vpack.c.bf16 %v1859_v15, %v1858_v14 }
 0x1d2   : > { %2740 = vmatprep.subr.bf16.mxu1 %v2739_v21 }
 0x1d4   : > { %2579 = vmatmul.mubr.f32.gmra.mrb[22].mxu1 %v3564_v22  ;;  %v805_v22 = vld [vmem:[%s3923_s16 + $0xe0] sm:$0xff] }
 0x1d5   : > { %2581 = vmatprep.mubr.f32.mxu1 %v3618_v37  ;;  %2742 = vmatpush3.bf16.msra.mxu1 %v2739_v21  ;;  %v2755_v32 = vpack.c.bf16 %v806_v31, %v805_v22  ;;  %v2695_v37 = vpack.c.bf16 %v792_v36, %v791_v35  ;;  %v2781_v21 = vpack.c.bf16 %v1843_v18, %v1842_v17  ;;  %v1846_v22 = vld [vmem:[%s3521_s15 + $0x60] sm:$0xff]  ;;  %v1847_v31 = vld [vmem:[%s3521_s15 + $0x68] sm:$0xff]  ;;  %v1848_v35 = vld [vmem:[%s3521_s15 + $0x70] sm:$0xff] }
 0x1d6   : > { %2744 = vmatprep.subr.bf16.mxu1 %v2743_v19  ;;  %v1849_v36 = vld [vmem:[%s3521_s15 + $0x78] sm:$0xff] }
 0x1d7   : > { %2696 = vmatprep.subr.bf16.mxu0 %v2695_v37 }
 0x1d8   : > { %2582 = vmatmul.mubr.f32.gmra.mrb[24].mxu1 %v3576_v26  ;;  %v808_v26 = vld [vmem:[%s3923_s16 + $0xf8] sm:$0xff]  ;;  %2698 = vmatpush3.bf16.msra.mxu0 %v2695_v37  ;;  %v2793_v37 = vpack.c.bf16 %v1849_v36, %v1848_v35 }
 0x1d9   : > { %2746 = vmatpush3.bf16.msra.mxu1 %v2743_v19  ;;  %v2759_v34 = vpack.c.bf16 %v808_v26, %v807_v33  ;;  %2764 = vmatprep.subr.bf16.mxu0 %v2763_v56  ;;  %v2783_v19 = vpack.c.bf16 %v1861_v25, %v1860_v23  ;;  %v1864_v33 = vld [vmem:[%s3521_s15 + $0xf0] sm:$0xff]  ;;  %v1865_v26 = vld [vmem:[%s3521_s15 + $0xf8] sm:$0xff]  ;;  %s3925_s15 = sld [smem:[#allocation23_spill]] }
 0x1da   : > { %2748 = vmatprep.subr.bf16.mxu1 %v2747_v24 }
 0x1dd   : > { %2750 = vmatpush3.bf16.msra.mxu1 %v2747_v24  ;;  %v2785_v24 = vpack.c.bf16 %v1845_v27, %v1844_v20 }
 0x1de   : > { %2752 = vmatprep.subr.bf16.mxu1 %v2751_v30 }
 0x1e1   : > { %2754 = vmatpush3.bf16.msra.mxu1 %v2751_v30  ;;  %v2787_v30 = vpack.c.bf16 %v1863_v29, %v1862_v28 }
 0x1e2   : > { %2756 = vmatprep.subr.bf16.mxu1 %v2755_v32 }
 0x1e5   : > { %2758 = vmatpush3.bf16.msra.mxu1 %v2755_v32  ;;  %v2789_v32 = vpack.c.bf16 %v1847_v31, %v1846_v22 }
 0x1e6   : > { %2760 = vmatprep.subr.bf16.mxu1 %v2759_v34 }
 0x1e9   : > { %2762 = vmatpush3.bf16.msra.mxu1 %v2759_v34  ;;  %v2791_v34 = vpack.c.bf16 %v1865_v26, %v1864_v33 }
 0x26b   : > { %v2460_v38 = vpop.f32.mrb[6].mxu1 }
 0x26c   : > { %v883_v39 = vpop.f32.mrb[7].mxu1  ;;  %2616 = vmatprep.mubr.f32.mxu1 %v2460_v38  ;;  %v1810_v38 = vld [vmem:[%s611_s2] sm:$0xff] }
 0x26d   : > { %2528 = vmatprep.mubr.f32.mxu0 %v883_v39  ;;  %v3180_v39 = vmov 0.0|0.0  }
 0x26f   : > { %v2465_v40 = vpop.f32.mrb[8].mxu1  ;;  %v2485_v41 = vpop.f32.mrb[2].mxu0 }
 0x270   : > { %v958_v42 = vpop.f32.mrb[9].mxu1  ;;  %2617 = vmatmul.mubr.f32.vlgmr.msra.gmra.mrb[18].mxu1 %v2465_v40  ;;  %v1258_v43 = vpop.f32.mrb[3].mxu0 }
 0x271   : > { %2529 = vmatmul.mubr.f32.vlgmr.msra.gmra.mrb[6].mxu0 %v958_v42 }
 0x272   : > { %2766 = vmatpush3.bf16.msra.mxu0 %v2765_v59 }
 0x273   : > { %v2470_v44 = vpop.f32.mrb[10].mxu1  ;;  %v2495_v45 = vpop.f32.mrb[4].mxu0  ;;  %2768 = vmatprep.subr.bf16.mxu0 %v2767_v62 }
 0x274   : > { %v1033_v46 = vpop.f32.mrb[11].mxu1  ;;  %2619 = vmatprep.mubr.f32.mxu1 %v2470_v44  ;;  %v1408_v47 = vpop.f32.mrb[5].mxu0 }
 0x275   : > { %2531 = vmatprep.mubr.f32.mxu0 %v1033_v46 }
 0x276   : > { %2770 = vmatpush3.bf16.msra.mxu0 %v2769_v1 }
 0x277   : > { %v2475_v48 = vpop.f32.mrb[12].mxu1  ;;  %2772 = vmatprep.subr.bf16.mxu0 %v2771_v4 }
 0x278   : > { %v1108_v49 = vpop.f32.mrb[13].mxu1  ;;  %2620 = vmatmul.mubr.f32.gmra.mrb[20].mxu1 %v2475_v48 }
 0x279   : > { %2532 = vmatmul.mubr.f32.gmra.mrb[8].mxu0 %v1108_v49 }
 0x27a   : > { %2774 = vmatpush3.bf16.msra.mxu0 %v2773_v7 }
 0x27b   : > { %v2480_v50 = vpop.f32.mrb[14].mxu1  ;;  %2776 = vmatprep.subr.bf16.mxu0 %v2775_v10 }
 0x27c   : > { %v1183_v51 = vpop.f32.mrb[15].mxu1  ;;  %2622 = vmatprep.mubr.f32.mxu1 %v2480_v50 }
 0x27d   : > { %2534 = vmatprep.mubr.f32.mxu0 %v1183_v51  ;;  %2623 = vmatmul.mubr.f32.gmra.mrb[22].mxu1 %v2485_v41  ;;  %v2273_v41 = vld [vmem:[%s3925_s15] ss:$0 sm:$0xff]  ;;  %s3800_s15 = scalar_lea.hbm %s3928_s19, %s2277_s5 }
 0x27e   : > { %2535 = vmatmul.mubr.f32.gmra.mrb[10].mxu0 %v1258_v43 }
 0x27f   : > { %v2490_v52 = vpop.f32.mrb[16].mxu1  ;;  %2778 = vmatpush3.bf16.msra.mxu0 %v2777_v13 }
 0x280   : > { %v1333_v53 = vpop.f32.mrb[17].mxu1  ;;  %2625 = vmatprep.mubr.f32.mxu1 %v2490_v52  ;;  %2780 = vmatprep.subr.bf16.mxu0 %v2779_v16 }
 0x281   : > { %2537 = vmatprep.mubr.f32.mxu0 %v1333_v53  ;;  %2626 = vmatmul.mubr.f32.gmra.mrb[24].mxu1 %v2495_v45 }
 0x282   : > { %2538 = vmatmul.mubr.f32.gmra.mrb[12].mxu0 %v1408_v47 }
 0x283   : > { %2782 = vmatpush3.bf16.msra.mxu0 %v2781_v21  ;;  %1937 = vmatprep.mubr.f32.mxu0 %v1810_v38 }
 0x284   : > { %2784 = vmatprep.subr.bf16.mxu0 %v2783_v19 }
 0x287   : > { %2786 = vmatpush3.bf16.msra.mxu0 %v2785_v24 }
 0x288   : > { %2788 = vmatprep.subr.bf16.mxu0 %v2787_v30 }
 0x28b   : > { %2790 = vmatpush3.bf16.msra.mxu0 %v2789_v32 }
 0x28c   : > { %2792 = vmatprep.subr.bf16.mxu0 %v2791_v34 }
 0x28f   : > { %2794 = vmatpush3.bf16.msra.mxu0 %v2793_v37 }
 0x290   : > { %2795 = vmatprep.subr.bf16.mxu0 %v3180_v39 }
 0x343   : > { %v2618_v40 = vpop.f32.mrb[18].mxu1 }
 0x344   : > { %v2530_v42 = vpop.f32.mrb[6].mxu0  ;;  %v1693_v43 = vpop.f32.mrb[19].mxu1 }
 0x345   : > { %v2821_v44 = vadd.f32 %v2618_v40, %v2530_v42  ;;  %v1483_v45 = vpop.f32.mrb[7].mxu0 }
 0x346   : > { %v2822_v46 = vadd.f32 %v1693_v43, %v1483_v45 }
 0x347   : > { %v1747_v47 = vadd.f32 %v2821_v44, %v2273_v41 }
 0x348   : > { %v1746_v48 = vadd.f32 %v2822_v46, %v2273_v41 }
 0x349   : > { %v1755_v49 = vmax.f32 %v1747_v47, 0.0 }
 0x34a   : > { %v1754_v50 = vmax.f32 %v1746_v48, 0.0 }
 0x34b   : > { %v1768_v51 = vrot.slane %v1755_v49, 4  ;;  %v2621_v52 = vpop.f32.mrb[20].mxu1 }
 0x34c   : > { %v1762_v53 = vrot.slane %v1754_v50, 4  ;;  %v2533_v54 = vpop.f32.mrb[8].mxu0  ;;  %v1703_v55 = vpop.f32.mrb[21].mxu1 }
 0x34d   : > { %v1769_v56 = vmax.f32 %v1755_v49, %v1768_v51  ;;  %v2823_v57 = vadd.f32 %v2621_v52, %v2533_v54  ;;  %v1493_v58 = vpop.f32.mrb[9].mxu0 }
 0x34e   : > { %v1763_v59 = vmax.f32 %v1754_v50, %v1762_v53  ;;  %v2824_v60 = vadd.f32 %v1703_v55, %v1493_v58 }
 0x34f   : > { %v1770_v61 = vrot.slane %v1769_v56, 2  ;;  %v1749_v62 = vadd.f32 %v2823_v57, %v2273_v41 }
 0x350   : > { %v1764_v63 = vrot.slane %v1763_v59, 2  ;;  %v1748_v0 = vadd.f32 %v2824_v60, %v2273_v41  ;;  %v2624_v1 = vpop.f32.mrb[22].mxu1 }
 0x351   : > { %v1771_v2 = vmax.f32 %v1769_v56, %v1770_v61  ;;  %v1757_v3 = vmax.f32 %v1749_v62, 0.0  ;;  %v2536_v4 = vpop.f32.mrb[10].mxu0  ;;  %v1713_v5 = vpop.f32.mrb[23].mxu1 }
 0x352   : > { %v1765_v6 = vmax.f32 %v1763_v59, %v1764_v63  ;;  %v1756_v7 = vmax.f32 %v1748_v0, 0.0  ;;  %v2825_v8 = vadd.f32 %v2624_v1, %v2536_v4  ;;  %v1503_v9 = vpop.f32.mrb[11].mxu0  ;;  %v1946_v4 = vld [vmem:[%s3765_s13] sm:$0xff] }
 0x353   : > { %v1772_v10 = vrot.slane %v1771_v2, 1  ;;  %v1780_v11 = vrot.slane %v1757_v3, 4  ;;  %v2826_v12 = vadd.f32 %v1713_v5, %v1503_v9  ;;  %v1947_v5 = vld [vmem:[%s3765_s13 + $0x8] sm:$0xff] }
 0x354   : > { %v1766_v13 = vrot.slane %v1765_v6, 1  ;;  %v1774_v14 = vrot.slane %v1756_v7, 4  ;;  %v1751_v15 = vadd.f32 %v2825_v8, %v2273_v41  ;;  %v2627_v16 = vpop.f32.mrb[24].mxu1  ;;  %v2796_v9 = vpack.c.bf16 %v1947_v5, %v1946_v4 }
 0x355   : > { %v1773_v17 = vmax.f32 %v1771_v2, %v1772_v10  ;;  %v1781_v18 = vmax.f32 %v1757_v3, %v1780_v11  ;;  %v1750_v21 = vadd.f32 %v2826_v12, %v2273_v41  ;;  %v2539_v23 = vpop.f32.mrb[12].mxu0  ;;  %v1723_v25 = vpop.f32.mrb[25].mxu1  ;;  %v1948_v11 = vld [vmem:[%s3765_s13 + $0x10] sm:$0xff]  ;;  %v1949_v12 = vld [vmem:[%s3765_s13 + $0x18] sm:$0xff] }
 0x356   : > { %v1767_v19 = vmax.f32 %v1765_v6, %v1766_v13  ;;  %v1775_v20 = vmax.f32 %v1756_v7, %v1774_v14  ;;  %v1759_v27 = vmax.f32 %v1751_v15, 0.0  ;;  %v2827_v24 = vadd.f32 %v2627_v16, %v2539_v23  ;;  %v1513_v28 = vpop.f32.mrb[13].mxu0  ;;  %v1950_v15 = vld [vmem:[%s3765_s13 + $0x20] sm:$0xff]  ;;  %v1951_v16 = vld [vmem:[%s3765_s13 + $0x28] sm:$0xff] }
 0x357   : > { %v1782_v29 = vrot.slane %v1781_v18, 2  ;;  %v1758_v30 = vmax.f32 %v1750_v21, 0.0  ;;  %v2828_v22 = vadd.f32 %v1723_v25, %v1513_v28  ;;  %v2799_v14 = vpack.c.bf16 %v1949_v12, %v1948_v11  ;;  %v1953_v21 = vld [vmem:[%s3765_s13 + $0x38] sm:$0xff]  ;;  %v1954_v25 = vld [vmem:[%s3765_s13 + $0x40] sm:$0xff] }
 0x358   : > { %v1820_v31 = vsel %vm1819_vm2, %v1773_v17, %v1767_v19  ;;  %v1776_v32 = vrot.slane %v1775_v20, 2  ;;  %v1792_v33 = vrot.slane %v1759_v27, 4  ;;  %v1753_v26 = vadd.f32 %v2827_v24, %v2273_v41  ;;  %v1955_v19 = vld [vmem:[%s3765_s13 + $0x48] sm:$0xff]  ;;  %v1957_v24 = vld [vmem:[%s3765_s13 + $0x58] sm:$0xff] }
 0x359   : > { %v1783_v34 = vmax.f32 %v1781_v18, %v1782_v29  ;;  %v1786_v35 = vrot.slane %v1758_v30, 4  ;;  %v1752_v36 = vadd.f32 %v2828_v22, %v2273_v41  ;;  %v2802_v17 = vpack.c.bf16 %v1951_v16, %v1950_v15  ;;  %v1952_v18 = vld [vmem:[%s3765_s13 + $0x30] sm:$0xff]  ;;  %v1958_v29 = vld [vmem:[%s3765_s13 + $0x60] sm:$0xff] }
 0x35a   : > { %v1777_v37 = vmax.f32 %v1775_v20, %v1776_v32  ;;  %v1793_v38 = vmax.f32 %v1759_v27, %v1792_v33  ;;  %v1761_v40 = vmax.f32 %v1753_v26, 0.0  ;;  %v2805_v23 = vpack.c.bf16 %v1953_v21, %v1952_v18  ;;  %v1956_v27 = vld [vmem:[%s3765_s13 + $0x50] sm:$0xff]  ;;  %v1961_v32 = vld [vmem:[%s3765_s13 + $0x78] sm:$0xff] }
 0x35b   : > { %v1784_v42 = vrot.slane %v1783_v34, 1  ;;  %v1787_v43 = vmax.f32 %v1758_v30, %v1786_v35  ;;  %v1760_v44 = vmax.f32 %v1752_v36, 0.0  ;;  %v2808_v20 = vpack.c.bf16 %v1955_v19, %v1954_v25  ;;  %v1959_v30 = vld [vmem:[%s3765_s13 + $0x68] sm:$0xff] }
 0x35c   : > { %v1778_v45 = vrot.slane %v1777_v37, 1  ;;  %v1794_v46 = vrot.slane %v1793_v38, 2  ;;  %v1804_v47 = vrot.slane %v1761_v40, 4  ;;  %v2811_v28 = vpack.c.bf16 %v1957_v24, %v1956_v27  ;;  %v2274_v35 = vld [vmem:[%s519_s30] ss:$0 sm:$0xff] }
 0x35d   : > { %v1788_v48 = vrot.slane %v1787_v43, 2  ;;  %v1798_v49 = vrot.slane %v1760_v44, 4  ;;  %v1785_v53 = vmax.f32 %v1783_v34, %v1784_v42  ;;  %v2814_v22 = vpack.c.bf16 %v1959_v30, %v1958_v29  ;;  %v2275_v42 = vld [vmem:[%s604_s20] ss:$0 sm:$0xff] }
 0x35e   : > { %v1779_v50 = vmax.f32 %v1777_v37, %v1778_v45  ;;  %v1795_v51 = vmax.f32 %v1793_v38, %v1794_v46  ;;  %v1805_v52 = vmax.f32 %v1761_v40, %v1804_v47  ;;  %v3182_v26 = vmov 0.0  }
 0x35f   : > { %v1789_v54 = vmax.f32 %v1787_v43, %v1788_v48  ;;  %v1799_v41 = vmax.f32 %v1760_v44, %v1798_v49 }
 0x360   : > { %v1822_v55 = vsel %vm1821_vm3, %v1779_v50, %v1820_v31  ;;  %v1796_v56 = vrot.slane %v1795_v51, 1  ;;  %v1806_v57 = vrot.slane %v1805_v52, 2  ;;  %v1960_v31 = vld [vmem:[%s3765_s13 + $0x70] sm:$0xff]  ;;  %s3085_s13 = sshll.u32 %s3183_s24, 4  ;;  %s3086_s13 = int_to_ptr.vmem [resolvable:$false] %s3085_s13 }
 0x361   : > { %v1790_v58 = vrot.slane %v1789_v54, 1  ;;  %v1800_v59 = vrot.slane %v1799_v41, 2  ;;  %v1824_v60 = vsel %vm1823_vm4, %v1785_v53, %v1822_v55  ;;  %v2817_v33 = vpack.c.bf16 %v1961_v32, %v1960_v31  ;;  %s3087_s30 = scalar_lea.vmem %s3086_s13, 256  ;;  %p3088_p12 = scmp.lt.s32.totalorder %s3802_s18, %s3086_s13 }
 0x362   : > { %v1807_v61 = vmax.f32 %v1805_v52, %v1806_v57  ;;  %v1797_v0 = vmax.f32 %v1795_v51, %v1796_v56  ;;  %p3089_p5 = scmp.lt.s32.totalorder %s3087_s30, %s3081_s29 }
 0x363   : > { %v1791_v62 = vmax.f32 %v1789_v54, %v1790_v58  ;;  %v1801_v63 = vmax.f32 %v1799_v41, %v1800_v59 }
 0x364   : > { %v1808_v1 = vrot.slane %v1807_v61, 1  ;;  %p3090_p13 = por %p3089_p5, %p3088_p12 }
 0x365   : > { %v1802_v2 = vrot.slane %v1801_v63, 1  ;;  %v1826_v3 = vsel %vm1825_vm5, %v1791_v62, %v1824_v60 }
 0x366   : > { %v1828_v6 = vsel %vm1827_vm6, %v1797_v0, %v1826_v3  ;;  %v1809_v8 = vmax.f32 %v1807_v61, %v1808_v1  ;;  %p3091_p3 = pnand %p3090_p13, %p3084_p6 }
 0x367   : > { %v1803_v7 = vmax.f32 %v1801_v63, %v1802_v2 }
 0x369   : > { %v1830_v10 = vsel %vm1829_vm7, %v1803_v7, %v1828_v6 }
 0x36a   : > { %v1832_v13 = vsel %vm1831_vm8, %v1809_v8, %v1830_v10 }
 0x36b   : > { %1938 = vmatmul.mubr.f32.vlgmr.msra.gmra.mrb[14].mxu0 %v1832_v13 }
 0x36c   : > { %2797 = vmatpush3.bf16.msra.mxu0 %v2796_v9  ;;  %2660 = vmatprep.mubr.msk.f32.mxu0 %vm3181_vm9, %v3182_v26 }
 0x36d   : > { %2798 = vmatprep.subr.bf16.mxu0 %v3180_v39 }
 0x370   : > { %2800 = vmatpush3.bf16.msra.mxu0 %v2799_v14 }
 0x371   : > { %2801 = vmatprep.subr.bf16.mxu0 %v3180_v39 }
 0x374   : > { %2803 = vmatpush3.bf16.msra.mxu0 %v2802_v17 }
 0x375   : > { %2804 = vmatprep.subr.bf16.mxu0 %v3180_v39 }
 0x378   : > { %2806 = vmatpush3.bf16.msra.mxu0 %v2805_v23 }
 0x379   : > { %2807 = vmatprep.subr.bf16.mxu0 %v3180_v39 }
 0x37c   : > { %2809 = vmatpush3.bf16.msra.mxu0 %v2808_v20 }
 0x37d   : > { %2810 = vmatprep.subr.bf16.mxu0 %v3180_v39 }
 0x380   : > { %2812 = vmatpush3.bf16.msra.mxu0 %v2811_v28 }
 0x381   : > { %2813 = vmatprep.subr.bf16.mxu0 %v3180_v39 }
 0x384   : > { %2815 = vmatpush3.bf16.msra.mxu0 %v2814_v22 }
 0x385   : > { %2816 = vmatprep.subr.bf16.mxu0 %v3180_v39 }
 0x388   : > { %2818 = vmatpush3.bf16.msra.mxu0 %v2817_v33 }
 0x43e   : > { %v2420_v34 = vpop.f32.mrb[14].mxu0 }
 0x43f   : > { %v2421_v36 = vpop.f32.mrb[15].mxu0 }
 0x440   : > { %v2422_v37 = vadd.f32 %v2421_v36, %v2420_v34 }
 0x442   : > { %v1940_v38 = vadd.f32 %v2422_v37, %v2274_v35 }
 0x444   : > { %v1944_v40 = vmul.f32 0.01, %v1940_v38  ;;  %vm1943_vm10 = vcmp.gt.f32.partialorder %v1940_v38, 0.0 }
 0x446   : > { %v1945_v39 = vsel %vm1943_vm10, %v1940_v38, %v1944_v40 }
 0x447   : > { %2661 = vmatmul.mubr.f32.vlgmr.msra.gmra.mrb[16].mxu0 %v1945_v39 }
 0x51a   : > { %v2035_v43 = vpop.f32.mrb[16].mxu0 }
 0x51b   : > { %v2036_v44 = vadd.f32 %v2275_v42, %v2035_v43  ;;  %v2662_v45 = vpop.f32.mrb[17].mxu0 }
 0x51d   : > { %2039 = vst [vmem:[%s593_s6] sm:$0xff] %v2036_v44 }
 0x51e   : > { %3094 = shalt.err (!%p3091_p3)
}
 0x51f   : > { %s3095_s17 = scalar_lea.hbm %s3800_s15, 128  ;;  %s3099_s11 = scalar_lea.hbm %s3928_s19, 384 }
 0x520   : > { %p3096_p7 = scmp.ne.s32.totalorder %s3800_s15, %s3095_s17  ;;  %p3100_p11 = scmp.lt.u32.totalorder %s3800_s15, %s3928_s19 }
 0x521   : > { %p3101_p1 = scmp.lt.u32.totalorder %s3099_s11, %s3095_s17  ;;  %p3103_p0 = scmp.lt.u32.totalorder %s3095_s17, %s3800_s15 }
 0x522   : > { %p3097_p9 = pnand %p3096_p7, %p3929_p2 }
 0x523   : > { %p3102_p10 = por %p3101_p1, %p3100_p11 }
 0x524   : > { %p3098_p4 = pneg %p3097_p9 }
 0x525   : > { %p3104_p8 = por %p3103_p0, %p3102_p10 }
 0x527   : > { %p3105_p6 = pnand %p3104_p8, %p3098_p4 }
 0x529   : > { %3108 = shalt.err (!%p3105_p6)
}
 0x52a   : > { %2851 = dma.vmem_to_hbm [thread:$0]  (%p3929_p2), %s3802_s18, 128, %s3800_s15, %s2041_s21  }
 0x52b PF: > { %s3930_s5 = sld [smem:[#allocation15_spill]]  ;;  %s3931_s6 = sld [smem:[#allocation17_spill]] }
 0x52c   : > { %p2879_p12 = scmp.ge.s32.totalorder %s3171_s26, 2 }
 0x531   : > { %s2067_s2 = sand.u32 1, %s3930_s5   ;;  %p3932_p5 = scmp.ne.s32.totalorder %s3931_s6, 0 }
 0x532   : > { %s2068_s27 = scalar_lea.sflag [#allocation4], %s2067_s2 }
 0x533   : > { %p2871_p13 = pnand %p2879_p12, %p3932_p5 }
 0x535   : > { %3146 = dma.done.wait (!%p2871_p13), %s2068_s27, 128  }
 0x536   : > { %3148 = vsyncadd (!%p2871_p13), %s2068_s27, 4294967168  ;;  %s27_s26 = sadd.s32 1, %s3171_s26   ;;  %s3933_s21 = smov %s3155_s22 }
 0x537   : > { %p24_p3 = scmp.ge.s32.totalorder %s27_s26, 5   ;;  %s3934_s22 = smov %s3159_s23 }
 0x538   : > { %s3935_s23 = smov %s3382_s0  ;;  %s3936_s24 = smov %s3167_s25 }
 0x539   : > { %s3937_s25 = smov %s3939_s28  ;;  %26 = sbr.rel (!%p24_p3) target bundleno = 16 (0x10), region = 151 }
 0x540   :  { %2073 = vsyncpa [#allocation3], 1 }
 0x541   :  { %2075 = vsyncpa [#allocation3 + $0x1], 1 }
 0x542   :  { %2076 = vsyncpa [#allocation6], 1 }
 0x543   :  { %2077 = vsyncpa [#allocation4], 1 }
 0x544   :  { %2079 = vsyncpa [#allocation4 + $0x1], 1 }

</bundles_post_ra>
